<compile_context>
chip_gen: v7x
topology: tpu7x:2x2x1
jax: 0.10.0
libtpu: 0.0.40
codegen_flags: <defaults>
</compile_context>

<pallas_src>
import functools

import jax
import jax.numpy as jnp
from jax.experimental import pallas as pl
from jax.experimental.pallas import tpu as pltpu


def _round_up(x, m):
    return ((x + m - 1) // m) * m


def _encoder_kernel(x_ref, w1_ref, b1_ref, wh_ref, bh_ref, out_ref):
    # Hidden layer: [TB, Din] @ [Din, H] -> [TB, H] on the MXU; bias+ReLU on VPU.
    h = jnp.dot(x_ref[...], w1_ref[...], preferred_element_type=jnp.float32)
    h = jnp.maximum(h + b1_ref[...], 0.0)
    # Fused mean/logvar head: single [TB, H] @ [H, 128] matmul, lane-dense output.
    out = jnp.dot(h.astype(wh_ref.dtype), wh_ref[...],
                  preferred_element_type=jnp.float32) + bh_ref[...]
    out_ref[...] = out.astype(out_ref.dtype)


@functools.partial(jax.jit, static_argnames=("block_b",))
def encoder_forward(x, w1, b1, wm, bm, wlv, blv, *, block_b=256):
    """x: [B, input_dim]; returns (mean, logvar) each [B, z_dim]."""
    B, d_in = x.shape
    hidden = w1.shape[1]
    z = wm.shape[1]
    dtype = x.dtype

    LANE = 128
    d_in_p = _round_up(d_in, LANE)    # 784 -> 896
    hid_p = _round_up(hidden, LANE)   # 500 -> 512
    out_p = _round_up(2 * z, LANE)    # 40  -> 128 (lane-dense fused head output)

    # Batch tile: multiple of 8, shrunk for tiny batches; batch is zero-padded
    # up to a whole number of tiles (pad rows are sliced off afterwards).
    tb = min(block_b, _round_up(B, 8))
    tb = max(8, (tb // 8) * 8)
    B_p = _round_up(B, tb)

    # Zero-pad activations / weights once, outside the kernel (mathematically exact).
    x_p = jnp.pad(x, ((0, B_p - B), (0, d_in_p - d_in)))
    w1_p = jnp.pad(w1, ((0, d_in_p - d_in), (0, hid_p - hidden)))
    b1_p = jnp.pad(b1, ((0, 0), (0, hid_p - hidden)))
    # Fused mean|logvar head: [hid_p, 128] weight and [1, 128] bias.
    wh = jnp.pad(jnp.concatenate([wm, wlv], axis=1),
                 ((0, hid_p - hidden), (0, out_p - 2 * z)))
    bh = jnp.pad(jnp.concatenate([bm, blv], axis=1),
                 ((0, 0), (0, out_p - 2 * z)))

    grid = (B_p // tb,)

    itemsize = jnp.dtype(dtype).itemsize
    flops = 2 * B_p * (d_in_p * hid_p + hid_p * out_p)
    bytes_accessed = (x_p.size + w1_p.size + b1_p.size + wh.size + bh.size
                      + B_p * out_p) * itemsize

    out = pl.pallas_call(
        _encoder_kernel,
        out_shape=jax.ShapeDtypeStruct((B_p, out_p), dtype),
        grid_spec=pltpu.PrefetchScalarGridSpec(
            num_scalar_prefetch=0,
            grid=grid,
            in_specs=[
                pl.BlockSpec((tb, d_in_p), lambda i: (i, 0)),     # x tile
                pl.BlockSpec((d_in_p, hid_p), lambda i: (0, 0)),  # W1 (resident)
                pl.BlockSpec((1, hid_p), lambda i: (0, 0)),       # b1
                pl.BlockSpec((hid_p, out_p), lambda i: (0, 0)),   # fused head W
                pl.BlockSpec((1, out_p), lambda i: (0, 0)),       # fused head b
            ],
            out_specs=pl.BlockSpec((tb, out_p), lambda i: (i, 0)),
        ),
        compiler_params=pltpu.CompilerParams(
            dimension_semantics=("parallel",),
        ),
        cost_estimate=pl.CostEstimate(
            flops=flops, transcendentals=0, bytes_accessed=bytes_accessed),
    )(x_p, w1_p, b1_p, wh, bh)

    mean = out[:B, :z]
    logvar = out[:B, z:2 * z]
    return mean, logvar


def init_encoder_params(key, input_dim=784, hidden_dim=500, z_dim=20,
                        dtype=jnp.float32):
    """Deterministic init mirroring nn.Linear's U(-1/sqrt(fan_in), 1/sqrt(fan_in)).
    Weights are returned already transposed to [in, out]; biases are [1, out]."""
    ks = jax.random.split(key, 6)

    def linear(kw, kb, fan_in, fan_out):
        bound = 1.0 / jnp.sqrt(jnp.asarray(fan_in, dtype))
        w = jax.random.uniform(kw, (fan_in, fan_out), dtype, -bound, bound)
        b = jax.random.uniform(kb, (1, fan_out), dtype, -bound, bound)
        return w, b

    w1, b1 = linear(ks[0], ks[1], input_dim, hidden_dim)
    wm, bm = linear(ks[2], ks[3], hidden_dim, z_dim)
    wlv, blv = linear(ks[4], ks[5], hidden_dim, z_dim)
    return w1, b1, wm, bm, wlv, blv


def _reference_forward(x, w1, b1, wm, bm, wlv, blv):
    h = jnp.maximum(x @ w1 + b1, 0.0)
    return h @ wm + bm, h @ wlv + blv


if __name__ == "__main__":
    key = jax.random.PRNGKey(0)
    k_params, k_x1, k_x2 = jax.random.split(key, 3)

    # Shapes consistent with Encoder(input_dim=784, hidden_dim=500, z_dim=20).
    input_dim, hidden_dim, z_dim = 784, 500, 20
    params = init_encoder_params(k_params, input_dim, hidden_dim, z_dim)

    # Case 1: small, tile-aligned batch.
    x1 = jax.random.normal(k_x1, (8, input_dim), jnp.float32)
    mean1, logvar1 = encoder_forward(x1, *params)
    jax.block_until_ready((mean1, logvar1))
    ref_m1, ref_lv1 = _reference_forward(x1, *params)
    assert mean1.shape == (8, z_dim) and logvar1.shape == (8, z_dim)
    assert jnp.allclose(mean1, ref_m1, atol=1e-4, rtol=1e-4)
    assert jnp.allclose(logvar1, ref_lv1, atol=1e-4, rtol=1e-4)

    # Case 2: batch not divisible by 8 (exercises the pad-and-slice path).
    x2 = jax.random.normal(k_x2, (20, input_dim), jnp.float32)
    mean2, logvar2 = encoder_forward(x2, *params)
    jax.block_until_ready((mean2, logvar2))
    ref_m2, ref_lv2 = _reference_forward(x2, *params)
    assert mean2.shape == (20, z_dim) and logvar2.shape == (20, z_dim)
    assert jnp.allclose(mean2, ref_m2, atol=1e-4, rtol=1e-4)
    assert jnp.allclose(logvar2, ref_lv2, atol=1e-4, rtol=1e-4)

    print("KERNEL_OK")
</pallas_src>

<mosaic_0001>
module attributes {stable_mosaic.version = 11 : i64} {
  func.func @_encoder_kernel(%arg0: i32, %arg1: memref<8x896xf32, #tpu.memory_space<vmem>>, %arg2: memref<896x512xf32, #tpu.memory_space<vmem>>, %arg3: memref<1x512xf32, #tpu.memory_space<vmem>>, %arg4: memref<512x128xf32, #tpu.memory_space<vmem>>, %arg5: memref<1x128xf32, #tpu.memory_space<vmem>>, %arg6: memref<8x128xf32, #tpu.memory_space<vmem>>) attributes {dimension_semantics = [#tpu.dimension_semantics<parallel>], iteration_bounds = array<i64: 1>, scalar_prefetch = 0 : i64, scratch_operands = 0 : i64, tpu.core_type = #tpu.core_type<tc>, window_params = [{transform_indices = @transform_0, window_bounds = array<i64: 8, 896>}, {pipeline_mode = #tpu.pipeline_mode<synchronous>, transform_indices = @transform_1, window_bounds = array<i64: 896, 512>}, {pipeline_mode = #tpu.pipeline_mode<synchronous>, transform_indices = @transform_2, window_bounds = array<i64: 1, 512>}, {pipeline_mode = #tpu.pipeline_mode<synchronous>, transform_indices = @transform_3, window_bounds = array<i64: 512, 128>}, {pipeline_mode = #tpu.pipeline_mode<synchronous>, transform_indices = @transform_4, window_bounds = array<i64: 1, 128>}, {transform_indices = @transform_5, window_bounds = array<i64: 8, 128>}]} {
    %c0 = arith.constant 0 : index
    %c0_0 = arith.constant 0 : index
    %0 = vector.load %arg1[%c0, %c0_0] : memref<8x896xf32, #tpu.memory_space<vmem>>, vector<8x896xf32>
    %c0_1 = arith.constant 0 : index
    %c0_2 = arith.constant 0 : index
    %1 = vector.load %arg2[%c0_1, %c0_2] : memref<896x512xf32, #tpu.memory_space<vmem>>, vector<896x512xf32>
    %cst = arith.constant dense<0.000000e+00> : vector<8x512xf32>
    %2 = tpu.matmul %0, %1, %cst {dimension_numbers = #tpu.dot_dimension_numbers<[1], [0], [0], [1], [0, 0, 1, 1], [], []>} : vector<8x896xf32>, vector<896x512xf32>, vector<8x512xf32> -> vector<8x512xf32>
    %c0_3 = arith.constant 0 : index
    %c0_4 = arith.constant 0 : index
    %3 = vector.load %arg3[%c0_3, %c0_4] : memref<1x512xf32, #tpu.memory_space<vmem>>, vector<1x512xf32>
    %4 = vector.broadcast %3 : vector<1x512xf32> to vector<8x512xf32>
    %5 = arith.addf %2, %4 : vector<8x512xf32>
    %cst_5 = arith.constant 0.000000e+00 : f32
    %6 = vector.broadcast %cst_5 : f32 to vector<8x512xf32>
    %7 = arith.maximumf %5, %6 : vector<8x512xf32>
    %c0_6 = arith.constant 0 : index
    %c0_7 = arith.constant 0 : index
    %8 = vector.load %arg4[%c0_6, %c0_7] : memref<512x128xf32, #tpu.memory_space<vmem>>, vector<512x128xf32>
    %cst_8 = arith.constant dense<0.000000e+00> : vector<8x128xf32>
    %9 = tpu.matmul %7, %8, %cst_8 {dimension_numbers = #tpu.dot_dimension_numbers<[1], [0], [0], [1], [0, 0, 1, 1], [], []>} : vector<8x512xf32>, vector<512x128xf32>, vector<8x128xf32> -> vector<8x128xf32>
    %c0_9 = arith.constant 0 : index
    %c0_10 = arith.constant 0 : index
    %10 = vector.load %arg5[%c0_9, %c0_10] : memref<1x128xf32, #tpu.memory_space<vmem>>, vector<1x128xf32>
    %11 = vector.broadcast %10 : vector<1x128xf32> to vector<8x128xf32>
    %12 = arith.addf %9, %11 : vector<8x128xf32>
    %c0_11 = arith.constant 0 : index
    %c0_12 = arith.constant 0 : index
    %13 = vector.load %arg6[%c0_11, %c0_12] : memref<8x128xf32, #tpu.memory_space<vmem>>, vector<8x128xf32>
    tpu.vector_store %arg6[%c0_11, %c0_12], %12 {strides = array<i32>} : memref<8x128xf32, #tpu.memory_space<vmem>>, vector<8x128xf32>,
    return
  }
  func.func @transform_0(%arg0: i32) -> (i32, i32) {
    %c0_i32 = arith.constant 0 : i32
    %c0_i32_0 = arith.constant 0 : i32
    return %arg0, %c0_i32 : i32, i32
  }
  func.func @transform_1(%arg0: i32) -> (i32, i32) {
    %c0_i32 = arith.constant 0 : i32
    %c0_i32_0 = arith.constant 0 : i32
    %c0_i32_1 = arith.constant 0 : i32
    return %c0_i32, %c0_i32_0 : i32, i32
  }
  func.func @transform_2(%arg0: i32) -> (i32, i32) {
    %c0_i32 = arith.constant 0 : i32
    %c0_i32_0 = arith.constant 0 : i32
    %c0_i32_1 = arith.constant 0 : i32
    return %c0_i32, %c0_i32_0 : i32, i32
  }
  func.func @transform_3(%arg0: i32) -> (i32, i32) {
    %c0_i32 = arith.constant 0 : i32
    %c0_i32_0 = arith.constant 0 : i32
    %c0_i32_1 = arith.constant 0 : i32
    return %c0_i32, %c0_i32_0 : i32, i32
  }
  func.func @transform_4(%arg0: i32) -> (i32, i32) {
    %c0_i32 = arith.constant 0 : i32
    %c0_i32_0 = arith.constant 0 : i32
    %c0_i32_1 = arith.constant 0 : i32
    return %c0_i32, %c0_i32_0 : i32, i32
  }
  func.func @transform_5(%arg0: i32) -> (i32, i32) {
    %c0_i32 = arith.constant 0 : i32
    %c0_i32_0 = arith.constant 0 : i32
    return %arg0, %c0_i32 : i32, i32
  }
}

</mosaic_0001>

<bundles_post_ra>
// kernel: encoder_forward.1
= control target key start
LH: loop header
LB: loop body
LE: loop exit
PB: predicated region body
PF: predicated region fallthrough
CT: control target
= control target key end

     0   :  { %s3482_s1 = inlined_call_operand.vmem [shape: f32[896,512], index: 1, kind: input, shape index: {}]   ;;  %s3483_s0 = inlined_call_operand.vmem [shape: f32[8,896], index: 0, kind: input, shape index: {}]   ;;  %s3484_s3 = inlined_call_operand.vmem [shape: f32[512,128], index: 3, kind: input, shape index: {}]   ;;  %s3485_s2 = inlined_call_operand.vmem [shape: f32[1,512], index: 2, kind: input, shape index: {}]   ;;  %s3486_s4 = inlined_call_operand.vmem [shape: f32[1,128], index: 4, kind: input, shape index: {}]   ;;  %s3487_s5 = inlined_call_operand.vmem [shape: f32[8,128], index: 5, kind: output, shape index: {}]  }
   0x1   :  { %v28_v0 = vld [vmem:[%s3482_s1 + $0x8] sm:$0xff]  ;;  %v30_v2 = vld [vmem:[%s3482_s1 + $0x18] sm:$0xff]  ;;  %v27_v5 = vld [vmem:[%s3482_s1] sm:$0xff] }
   0x2   :  { %v32_v1 = vld [vmem:[%s3482_s1 + $0x28] sm:$0xff]  ;;  %v34_v4 = vld [vmem:[%s3482_s1 + $0x38] sm:$0xff]  ;;  %v31_v6 = vld [vmem:[%s3482_s1 + $0x20] sm:$0xff] }
   0x3   :  { %v1356_v3 = vpack.c.bf16 %v32_v1, %v28_v0  ;;  %v1580_v7 = vpack.c.bf16 %v34_v4, %v30_v2  ;;  %v1358_v8 = vpack.c.bf16 %v31_v6, %v27_v5  ;;  %v29_v9 = vld [vmem:[%s3482_s1 + $0x10] sm:$0xff]  ;;  %v36_v11 = vld [vmem:[%s3482_s1 + $0x48] sm:$0xff]  ;;  %v38_v14 = vld [vmem:[%s3482_s1 + $0x58] sm:$0xff] }
   0x4   :  { %v33_v10 = vld [vmem:[%s3482_s1 + $0x30] sm:$0xff]  ;;  %v40_v13 = vld [vmem:[%s3482_s1 + $0x68] sm:$0xff]  ;;  %v42_v15 = vld [vmem:[%s3482_s1 + $0x78] sm:$0xff] }
   0x5   :  { %1357 = vmatprep.subr.bf16.mxu0 %v1356_v3  ;;  %v1582_v12 = vpack.c.bf16 %v33_v10, %v29_v9  ;;  %1581 = vmatprep.subr.bf16.mxu1 %v1580_v7  ;;  %v1360_v16 = vpack.c.bf16 %v40_v13, %v36_v11  ;;  %v1584_v17 = vpack.c.bf16 %v42_v15, %v38_v14  ;;  %v35_v18 = vld [vmem:[%s3482_s1 + $0x40] sm:$0xff]  ;;  %v37_v20 = vld [vmem:[%s3482_s1 + $0x50] sm:$0xff]  ;;  %v44_v23 = vld [vmem:[%s3482_s1 + $0x88] sm:$0xff] }
   0x6   :  { %1359 = vmatpush1.bf16.msra.mxu0 %v1358_v8  ;;  %v39_v19 = vld [vmem:[%s3482_s1 + $0x60] sm:$0xff]  ;;  %v41_v22 = vld [vmem:[%s3482_s1 + $0x70] sm:$0xff]  ;;  %v48_v24 = vld [vmem:[%s3482_s1 + $0xa8] sm:$0xff] }
   0x7   :  { %1583 = vmatpush1.bf16.msra.mxu1 %v1582_v12  ;;  %v1362_v21 = vpack.c.bf16 %v39_v19, %v35_v18  ;;  %1361 = vmatprep.subr.bf16.mxu0 %v1360_v16  ;;  %v1586_v25 = vpack.c.bf16 %v41_v22, %v37_v20  ;;  %v1364_v26 = vpack.c.bf16 %v48_v24, %v44_v23  ;;  %v46_v27 = vld [vmem:[%s3482_s1 + $0x98] sm:$0xff]  ;;  %v43_v29 = vld [vmem:[%s3482_s1 + $0x80] sm:$0xff]  ;;  %v45_v32 = vld [vmem:[%s3482_s1 + $0x90] sm:$0xff] }
   0x8   :  { %1585 = vmatprep.subr.bf16.mxu1 %v1584_v17  ;;  %v50_v28 = vld [vmem:[%s3482_s1 + $0xb8] sm:$0xff]  ;;  %v47_v31 = vld [vmem:[%s3482_s1 + $0xa0] sm:$0xff]  ;;  %v49_v33 = vld [vmem:[%s3482_s1 + $0xb0] sm:$0xff] }
   0x9   :  { %v1588_v30 = vpack.c.bf16 %v50_v28, %v46_v27  ;;  %v1366_v34 = vpack.c.bf16 %v47_v31, %v43_v29  ;;  %v52_v35 = vld [vmem:[%s3482_s1 + $0xc8] sm:$0xff]  ;;  %v54_v37 = vld [vmem:[%s3482_s1 + $0xd8] sm:$0xff]  ;;  %v1590_v38 = vpack.c.bf16 %v49_v33, %v45_v32  ;;  %v51_v41 = vld [vmem:[%s3482_s1 + $0xc0] sm:$0xff] }
   0xa   :  { %1363 = vmatpush1.bf16.msra.mxu0 %v1362_v21  ;;  %v56_v36 = vld [vmem:[%s3482_s1 + $0xe8] sm:$0xff]  ;;  %v58_v40 = vld [vmem:[%s3482_s1 + $0xf8] sm:$0xff]  ;;  %v55_v42 = vld [vmem:[%s3482_s1 + $0xe0] sm:$0xff] }
   0xb   :  { %1587 = vmatpush1.bf16.msra.mxu1 %v1586_v25  ;;  %1365 = vmatprep.subr.bf16.mxu0 %v1364_v26  ;;  %v1368_v39 = vpack.c.bf16 %v56_v36, %v52_v35  ;;  %v1592_v43 = vpack.c.bf16 %v58_v40, %v54_v37  ;;  %v53_v44 = vld [vmem:[%s3482_s1 + $0xd0] sm:$0xff]  ;;  %v60_v46 = vld [vmem:[%s3482_s1 + $0x108] sm:$0xff]  ;;  %v62_v48 = vld [vmem:[%s3482_s1 + $0x118] sm:$0xff]  ;;  %v1370_v50 = vpack.c.bf16 %v55_v42, %v51_v41 }
   0xc   :  { %1589 = vmatprep.subr.bf16.mxu1 %v1588_v30  ;;  %v57_v45 = vld [vmem:[%s3482_s1 + $0xf0] sm:$0xff]  ;;  %v64_v47 = vld [vmem:[%s3482_s1 + $0x128] sm:$0xff]  ;;  %v66_v49 = vld [vmem:[%s3482_s1 + $0x138] sm:$0xff] }
   0xd   :  { %v1594_v51 = vpack.c.bf16 %v57_v45, %v53_v44  ;;  %v1372_v52 = vpack.c.bf16 %v64_v47, %v60_v46  ;;  %v59_v53 = vld [vmem:[%s3482_s1 + $0x100] sm:$0xff]  ;;  %v61_v55 = vld [vmem:[%s3482_s1 + $0x110] sm:$0xff]  ;;  %v1596_v56 = vpack.c.bf16 %v66_v49, %v62_v48  ;;  %v68_v58 = vld [vmem:[%s3482_s1 + $0x148] sm:$0xff] }
   0xe   :  { %1367 = vmatpush1.bf16.msra.mxu0 %v1366_v34  ;;  %v63_v54 = vld [vmem:[%s3482_s1 + $0x120] sm:$0xff]  ;;  %v65_v57 = vld [vmem:[%s3482_s1 + $0x130] sm:$0xff]  ;;  %v72_v59 = vld [vmem:[%s3482_s1 + $0x168] sm:$0xff] }
   0xf   :  { %1591 = vmatpush1.bf16.msra.mxu1 %v1590_v38  ;;  %1369 = vmatprep.subr.bf16.mxu0 %v1368_v39  ;;  %v70_v60 = vld [vmem:[%s3482_s1 + $0x158] sm:$0xff]  ;;  %v1374_v62 = vpack.c.bf16 %v63_v54, %v59_v53  ;;  %v1598_v63 = vpack.c.bf16 %v65_v57, %v61_v55  ;;  %v1376_v0 = vpack.c.bf16 %v72_v59, %v68_v58  ;;  %v67_v1 = vld [vmem:[%s3482_s1 + $0x140] sm:$0xff]  ;;  %v69_v3 = vld [vmem:[%s3482_s1 + $0x150] sm:$0xff] }
  0x10   :  { %1593 = vmatprep.subr.bf16.mxu1 %v1592_v43  ;;  %v74_v61 = vld [vmem:[%s3482_s1 + $0x178] sm:$0xff]  ;;  %v71_v2 = vld [vmem:[%s3482_s1 + $0x160] sm:$0xff]  ;;  %v73_v5 = vld [vmem:[%s3482_s1 + $0x170] sm:$0xff] }
  0x11   :  { %v1600_v4 = vpack.c.bf16 %v74_v61, %v70_v60  ;;  %v76_v6 = vld [vmem:[%s3482_s1 + $0x188] sm:$0xff]  ;;  %v78_v8 = vld [vmem:[%s3482_s1 + $0x198] sm:$0xff]  ;;  %v1378_v10 = vpack.c.bf16 %v71_v2, %v67_v1  ;;  %v1602_v11 = vpack.c.bf16 %v73_v5, %v69_v3  ;;  %v75_v13 = vld [vmem:[%s3482_s1 + $0x180] sm:$0xff] }
  0x12   :  { %1371 = vmatpush1.bf16.msra.mxu0 %v1370_v50  ;;  %v80_v7 = vld [vmem:[%s3482_s1 + $0x1a8] sm:$0xff]  ;;  %v82_v9 = vld [vmem:[%s3482_s1 + $0x1b8] sm:$0xff]  ;;  %v79_v14 = vld [vmem:[%s3482_s1 + $0x1a0] sm:$0xff] }
  0x13   :  { %1595 = vmatpush1.bf16.msra.mxu1 %v1594_v51  ;;  %1373 = vmatprep.subr.bf16.mxu0 %v1372_v52  ;;  %v1380_v12 = vpack.c.bf16 %v80_v7, %v76_v6  ;;  %v77_v15 = vld [vmem:[%s3482_s1 + $0x190] sm:$0xff]  ;;  %v1604_v16 = vpack.c.bf16 %v82_v9, %v78_v8  ;;  %v84_v18 = vld [vmem:[%s3482_s1 + $0x1c8] sm:$0xff]  ;;  %v86_v20 = vld [vmem:[%s3482_s1 + $0x1d8] sm:$0xff]  ;;  %v1382_v22 = vpack.c.bf16 %v79_v14, %v75_v13 }
  0x14   :  { %1597 = vmatprep.subr.bf16.mxu1 %v1596_v56  ;;  %v81_v17 = vld [vmem:[%s3482_s1 + $0x1b0] sm:$0xff]  ;;  %v88_v19 = vld [vmem:[%s3482_s1 + $0x1e8] sm:$0xff]  ;;  %v90_v21 = vld [vmem:[%s3482_s1 + $0x1f8] sm:$0xff] }
  0x15   :  { %v1606_v23 = vpack.c.bf16 %v81_v17, %v77_v15  ;;  %v1384_v24 = vpack.c.bf16 %v88_v19, %v84_v18  ;;  %v83_v25 = vld [vmem:[%s3482_s1 + $0x1c0] sm:$0xff]  ;;  %v85_v27 = vld [vmem:[%s3482_s1 + $0x1d0] sm:$0xff]  ;;  %v1608_v28 = vpack.c.bf16 %v90_v21, %v86_v20  ;;  %v92_v30 = vld [vmem:[%s3482_s1 + $0x208] sm:$0xff] }
  0x16   :  { %1375 = vmatpush1.bf16.msra.mxu0 %v1374_v62  ;;  %v87_v26 = vld [vmem:[%s3482_s1 + $0x1e0] sm:$0xff]  ;;  %v89_v29 = vld [vmem:[%s3482_s1 + $0x1f0] sm:$0xff]  ;;  %v96_v31 = vld [vmem:[%s3482_s1 + $0x228] sm:$0xff] }
  0x17   :  { %1599 = vmatpush1.bf16.msra.mxu1 %v1598_v63  ;;  %1377 = vmatprep.subr.bf16.mxu0 %v1376_v0  ;;  %v94_v32 = vld [vmem:[%s3482_s1 + $0x218] sm:$0xff]  ;;  %v1386_v34 = vpack.c.bf16 %v87_v26, %v83_v25  ;;  %v1610_v35 = vpack.c.bf16 %v89_v29, %v85_v27  ;;  %v1388_v36 = vpack.c.bf16 %v96_v31, %v92_v30  ;;  %v91_v37 = vld [vmem:[%s3482_s1 + $0x200] sm:$0xff]  ;;  %v93_v39 = vld [vmem:[%s3482_s1 + $0x210] sm:$0xff] }
  0x18   :  { %1601 = vmatprep.subr.bf16.mxu1 %v1600_v4  ;;  %v98_v33 = vld [vmem:[%s3482_s1 + $0x238] sm:$0xff]  ;;  %v95_v38 = vld [vmem:[%s3482_s1 + $0x220] sm:$0xff]  ;;  %v97_v41 = vld [vmem:[%s3482_s1 + $0x230] sm:$0xff] }
  0x19   :  { %v1612_v40 = vpack.c.bf16 %v98_v33, %v94_v32  ;;  %v100_v42 = vld [vmem:[%s3482_s1 + $0x248] sm:$0xff]  ;;  %v102_v44 = vld [vmem:[%s3482_s1 + $0x258] sm:$0xff]  ;;  %v1390_v46 = vpack.c.bf16 %v95_v38, %v91_v37  ;;  %v1614_v47 = vpack.c.bf16 %v97_v41, %v93_v39  ;;  %v99_v49 = vld [vmem:[%s3482_s1 + $0x240] sm:$0xff] }
  0x1a   :  { %1379 = vmatpush1.bf16.msra.mxu0 %v1378_v10  ;;  %v104_v43 = vld [vmem:[%s3482_s1 + $0x268] sm:$0xff]  ;;  %v106_v45 = vld [vmem:[%s3482_s1 + $0x278] sm:$0xff]  ;;  %v103_v50 = vld [vmem:[%s3482_s1 + $0x260] sm:$0xff] }
  0x1b   :  { %1603 = vmatpush1.bf16.msra.mxu1 %v1602_v11  ;;  %1381 = vmatprep.subr.bf16.mxu0 %v1380_v12  ;;  %v1392_v48 = vpack.c.bf16 %v104_v43, %v100_v42  ;;  %v101_v51 = vld [vmem:[%s3482_s1 + $0x250] sm:$0xff]  ;;  %v1616_v52 = vpack.c.bf16 %v106_v45, %v102_v44  ;;  %v108_v54 = vld [vmem:[%s3482_s1 + $0x288] sm:$0xff]  ;;  %v110_v56 = vld [vmem:[%s3482_s1 + $0x298] sm:$0xff]  ;;  %v1394_v58 = vpack.c.bf16 %v103_v50, %v99_v49 }
  0x1c   :  { %1605 = vmatprep.subr.bf16.mxu1 %v1604_v16  ;;  %v105_v53 = vld [vmem:[%s3482_s1 + $0x270] sm:$0xff]  ;;  %v112_v55 = vld [vmem:[%s3482_s1 + $0x2a8] sm:$0xff]  ;;  %v114_v57 = vld [vmem:[%s3482_s1 + $0x2b8] sm:$0xff] }
  0x1d   :  { %v1618_v59 = vpack.c.bf16 %v105_v53, %v101_v51  ;;  %v1396_v60 = vpack.c.bf16 %v112_v55, %v108_v54  ;;  %v107_v61 = vld [vmem:[%s3482_s1 + $0x280] sm:$0xff]  ;;  %v109_v63 = vld [vmem:[%s3482_s1 + $0x290] sm:$0xff]  ;;  %v1620_v0 = vpack.c.bf16 %v114_v57, %v110_v56  ;;  %v116_v2 = vld [vmem:[%s3482_s1 + $0x2c8] sm:$0xff] }
  0x1e   :  { %1383 = vmatpush1.bf16.msra.mxu0 %v1382_v22  ;;  %v111_v62 = vld [vmem:[%s3482_s1 + $0x2a0] sm:$0xff]  ;;  %v113_v1 = vld [vmem:[%s3482_s1 + $0x2b0] sm:$0xff]  ;;  %v120_v3 = vld [vmem:[%s3482_s1 + $0x2e8] sm:$0xff] }
  0x1f   :  { %1607 = vmatpush1.bf16.msra.mxu1 %v1606_v23  ;;  %1385 = vmatprep.subr.bf16.mxu0 %v1384_v24  ;;  %v118_v4 = vld [vmem:[%s3482_s1 + $0x2d8] sm:$0xff]  ;;  %v1398_v6 = vpack.c.bf16 %v111_v62, %v107_v61  ;;  %v115_v7 = vld [vmem:[%s3482_s1 + $0x2c0] sm:$0xff]  ;;  %v1622_v8 = vpack.c.bf16 %v113_v1, %v109_v63  ;;  %v1400_v9 = vpack.c.bf16 %v120_v3, %v116_v2  ;;  %v117_v11 = vld [vmem:[%s3482_s1 + $0x2d0] sm:$0xff] }
  0x20   :  { %1609 = vmatprep.subr.bf16.mxu1 %v1608_v28  ;;  %v122_v5 = vld [vmem:[%s3482_s1 + $0x2f8] sm:$0xff]  ;;  %v119_v10 = vld [vmem:[%s3482_s1 + $0x2e0] sm:$0xff]  ;;  %v121_v12 = vld [vmem:[%s3482_s1 + $0x2f0] sm:$0xff] }
  0x21   :  { %v1624_v13 = vpack.c.bf16 %v122_v5, %v118_v4  ;;  %v124_v14 = vld [vmem:[%s3482_s1 + $0x308] sm:$0xff]  ;;  %v126_v17 = vld [vmem:[%s3482_s1 + $0x318] sm:$0xff]  ;;  %v1402_v19 = vpack.c.bf16 %v119_v10, %v115_v7  ;;  %v1626_v20 = vpack.c.bf16 %v121_v12, %v117_v11  ;;  %v123_v22 = vld [vmem:[%s3482_s1 + $0x300] sm:$0xff] }
  0x22   :  { %1387 = vmatpush1.bf16.msra.mxu0 %v1386_v34  ;;  %v128_v15 = vld [vmem:[%s3482_s1 + $0x328] sm:$0xff]  ;;  %v130_v18 = vld [vmem:[%s3482_s1 + $0x338] sm:$0xff]  ;;  %v127_v23 = vld [vmem:[%s3482_s1 + $0x320] sm:$0xff] }
  0x23   :  { %1611 = vmatpush1.bf16.msra.mxu1 %v1610_v35  ;;  %1389 = vmatprep.subr.bf16.mxu0 %v1388_v36  ;;  %v21_v16 = vld [vmem:[%s3483_s0 + $0x8] sm:$0xff]  ;;  %v1404_v21 = vpack.c.bf16 %v128_v15, %v124_v14  ;;  %v125_v24 = vld [vmem:[%s3482_s1 + $0x310] sm:$0xff]  ;;  %v1628_v25 = vpack.c.bf16 %v130_v18, %v126_v17  ;;  %v134_v29 = vld [vmem:[%s3482_s1 + $0x358] sm:$0xff]  ;;  %v1406_v31 = vpack.c.bf16 %v127_v23, %v123_v22 }
  0x24   :  { %1613 = vmatprep.subr.bf16.mxu1 %v1612_v40  ;;  %561 = vmatprep.mubr.f32.mxu0 %v21_v16  ;;  %v129_v26 = vld [vmem:[%s3482_s1 + $0x330] sm:$0xff]  ;;  %v132_v27 = vld [vmem:[%s3482_s1 + $0x348] sm:$0xff]  ;;  %v138_v30 = vld [vmem:[%s3482_s1 + $0x378] sm:$0xff] }
  0x25   :  { %845 = vmatprep.mubr.f32.mxu1 %v21_v16  ;;  %v136_v28 = vld [vmem:[%s3482_s1 + $0x368] sm:$0xff]  ;;  %v1630_v32 = vpack.c.bf16 %v129_v26, %v125_v24  ;;  %v131_v34 = vld [vmem:[%s3482_s1 + $0x340] sm:$0xff]  ;;  %v133_v36 = vld [vmem:[%s3482_s1 + $0x350] sm:$0xff]  ;;  %v1632_v37 = vpack.c.bf16 %v138_v30, %v134_v29 }
  0x26   :  { %1391 = vmatpush1.bf16.msra.mxu0 %v1390_v46  ;;  %v1408_v33 = vpack.c.bf16 %v136_v28, %v132_v27  ;;  %v135_v35 = vld [vmem:[%s3482_s1 + $0x360] sm:$0xff]  ;;  %v137_v38 = vld [vmem:[%s3482_s1 + $0x370] sm:$0xff]  ;;  %v140_v39 = vld [vmem:[%s3482_s1 + $0x388] sm:$0xff] }
  0x27   :  { %1615 = vmatpush1.bf16.msra.mxu1 %v1614_v47  ;;  %1393 = vmatprep.subr.bf16.mxu0 %v1392_v48  ;;  %v144_v40 = vld [vmem:[%s3482_s1 + $0x3a8] sm:$0xff]  ;;  %v142_v41 = vld [vmem:[%s3482_s1 + $0x398] sm:$0xff]  ;;  %v1410_v43 = vpack.c.bf16 %v135_v35, %v131_v34  ;;  %v1634_v44 = vpack.c.bf16 %v137_v38, %v133_v36  ;;  %v139_v46 = vld [vmem:[%s3482_s1 + $0x380] sm:$0xff] }
  0x28   :  { %1617 = vmatprep.subr.bf16.mxu1 %v1616_v52  ;;  %v146_v42 = vld [vmem:[%s3482_s1 + $0x3b8] sm:$0xff]  ;;  %v1412_v45 = vpack.c.bf16 %v144_v40, %v140_v39  ;;  %v143_v47 = vld [vmem:[%s3482_s1 + $0x3a0] sm:$0xff]  ;;  %v141_v48 = vld [vmem:[%s3482_s1 + $0x390] sm:$0xff] }
  0x29   :  { %v1636_v49 = vpack.c.bf16 %v146_v42, %v142_v41  ;;  %v145_v50 = vld [vmem:[%s3482_s1 + $0x3b0] sm:$0xff]  ;;  %v148_v51 = vld [vmem:[%s3482_s1 + $0x3c8] sm:$0xff]  ;;  %v150_v53 = vld [vmem:[%s3482_s1 + $0x3d8] sm:$0xff]  ;;  %v1414_v55 = vpack.c.bf16 %v143_v47, %v139_v46 }
  0x2a   :  { %1395 = vmatpush1.bf16.msra.mxu0 %v1394_v58  ;;  %v152_v52 = vld [vmem:[%s3482_s1 + $0x3e8] sm:$0xff]  ;;  %v154_v54 = vld [vmem:[%s3482_s1 + $0x3f8] sm:$0xff]  ;;  %v1638_v56 = vpack.c.bf16 %v145_v50, %v141_v48  ;;  %v147_v58 = vld [vmem:[%s3482_s1 + $0x3c0] sm:$0xff] }
  0x2b   :  { %1619 = vmatpush1.bf16.msra.mxu1 %v1618_v59  ;;  %1397 = vmatprep.subr.bf16.mxu0 %v1396_v60  ;;  %v1416_v57 = vpack.c.bf16 %v152_v52, %v148_v51  ;;  %v151_v59 = vld [vmem:[%s3482_s1 + $0x3e0] sm:$0xff]  ;;  %v149_v60 = vld [vmem:[%s3482_s1 + $0x3d0] sm:$0xff]  ;;  %v1640_v61 = vpack.c.bf16 %v154_v54, %v150_v53  ;;  %v156_v63 = vld [vmem:[%s3482_s1 + $0x408] sm:$0xff] }
  0x2c   :  { %1621 = vmatprep.subr.bf16.mxu1 %v1620_v0  ;;  %v153_v62 = vld [vmem:[%s3482_s1 + $0x3f0] sm:$0xff]  ;;  %v160_v0 = vld [vmem:[%s3482_s1 + $0x428] sm:$0xff]  ;;  %v158_v1 = vld [vmem:[%s3482_s1 + $0x418] sm:$0xff]  ;;  %v1418_v3 = vpack.c.bf16 %v151_v59, %v147_v58 }
  0x2d   :  { %v162_v2 = vld [vmem:[%s3482_s1 + $0x438] sm:$0xff]  ;;  %v1642_v4 = vpack.c.bf16 %v153_v62, %v149_v60  ;;  %v1420_v5 = vpack.c.bf16 %v160_v0, %v156_v63  ;;  %v159_v7 = vld [vmem:[%s3482_s1 + $0x420] sm:$0xff]  ;;  %v161_v10 = vld [vmem:[%s3482_s1 + $0x430] sm:$0xff] }
  0x2e   :  { %1399 = vmatpush1.bf16.msra.mxu0 %v1398_v6  ;;  %v155_v6 = vld [vmem:[%s3482_s1 + $0x400] sm:$0xff]  ;;  %v164_v11 = vld [vmem:[%s3482_s1 + $0x448] sm:$0xff]  ;;  %v170_v14 = vld [vmem:[%s3482_s1 + $0x478] sm:$0xff] }
  0x2f   :  { %1623 = vmatpush1.bf16.msra.mxu1 %v1622_v8  ;;  %1401 = vmatprep.subr.bf16.mxu0 %v1400_v9  ;;  %v157_v8 = vld [vmem:[%s3482_s1 + $0x410] sm:$0xff]  ;;  %v1644_v9 = vpack.c.bf16 %v162_v2, %v158_v1  ;;  %v168_v12 = vld [vmem:[%s3482_s1 + $0x468] sm:$0xff]  ;;  %v20_v15 = vld [vmem:[%s3483_s0] sm:$0xff]  ;;  %v1422_v16 = vpack.c.bf16 %v159_v7, %v155_v6 }
  0x30   :  { %1625 = vmatprep.subr.bf16.mxu1 %v1624_v13  ;;  %v166_v13 = vld [vmem:[%s3482_s1 + $0x458] sm:$0xff]  ;;  %v1646_v17 = vpack.c.bf16 %v161_v10, %v157_v8  ;;  %v1424_v18 = vpack.c.bf16 %v168_v12, %v164_v11  ;;  %v169_v23 = vld [vmem:[%s3482_s1 + $0x470] sm:$0xff]  ;;  %v172_v24 = vld [vmem:[%s3482_s1 + $0x488] sm:$0xff] }
  0x31   :  { %v1648_v22 = vpack.c.bf16 %v170_v14, %v166_v13  ;;  %v174_v26 = vld [vmem:[%s3482_s1 + $0x498] sm:$0xff]  ;;  %v177_v35 = vld [vmem:[%s3482_s1 + $0x4b0] sm:$0xff]  ;;  %v180_v36 = vld [vmem:[%s3482_s1 + $0x4c8] sm:$0xff] }
  0x32   :  { %1403 = vmatpush1.bf16.msra.mxu0 %v1402_v19  ;;  %v163_v19 = vld [vmem:[%s3482_s1 + $0x440] sm:$0xff]  ;;  %v178_v27 = vld [vmem:[%s3482_s1 + $0x4b8] sm:$0xff]  ;;  %v185_v47 = vld [vmem:[%s3482_s1 + $0x4f0] sm:$0xff] }
  0x33   :  { %1627 = vmatpush1.bf16.msra.mxu1 %v1626_v20  ;;  %1405 = vmatprep.subr.bf16.mxu0 %v1404_v21  ;;  %v167_v20 = vld [vmem:[%s3482_s1 + $0x460] sm:$0xff]  ;;  %v165_v21 = vld [vmem:[%s3482_s1 + $0x450] sm:$0xff]  ;;  %v1652_v34 = vpack.c.bf16 %v178_v27, %v174_v26  ;;  %v182_v38 = vld [vmem:[%s3482_s1 + $0x4d8] sm:$0xff] }
  0x34   :  { %1629 = vmatprep.subr.bf16.mxu1 %v1628_v25  ;;  %v176_v25 = vld [vmem:[%s3482_s1 + $0x4a8] sm:$0xff]  ;;  %v1426_v28 = vpack.c.bf16 %v167_v20, %v163_v19  ;;  %v1650_v29 = vpack.c.bf16 %v169_v23, %v165_v21  ;;  %v186_v39 = vld [vmem:[%s3482_s1 + $0x4f8] sm:$0xff]  ;;  %v193_v59 = vld [vmem:[%s3482_s1 + $0x530] sm:$0xff] }
  0x35   :  { %v1428_v30 = vpack.c.bf16 %v176_v25, %v172_v24  ;;  %v1656_v46 = vpack.c.bf16 %v186_v39, %v182_v38  ;;  %v188_v48 = vld [vmem:[%s3482_s1 + $0x508] sm:$0xff]  ;;  %v190_v50 = vld [vmem:[%s3482_s1 + $0x518] sm:$0xff]  ;;  %v201_v7 = vld [vmem:[%s3482_s1 + $0x570] sm:$0xff] }
  0x36   :  { %1407 = vmatpush1.bf16.msra.mxu0 %v1406_v31  ;;  %v171_v31 = vld [vmem:[%s3482_s1 + $0x480] sm:$0xff]  ;;  %v194_v51 = vld [vmem:[%s3482_s1 + $0x538] sm:$0xff]  ;;  %v196_v60 = vld [vmem:[%s3482_s1 + $0x548] sm:$0xff] }
  0x37   :  { %1631 = vmatpush1.bf16.msra.mxu1 %v1630_v32  ;;  %1409 = vmatprep.subr.bf16.mxu0 %v1408_v33  ;;  %v175_v32 = vld [vmem:[%s3482_s1 + $0x4a0] sm:$0xff]  ;;  %v173_v33 = vld [vmem:[%s3482_s1 + $0x490] sm:$0xff]  ;;  %v1660_v58 = vpack.c.bf16 %v194_v51, %v190_v50  ;;  %v198_v62 = vld [vmem:[%s3482_s1 + $0x558] sm:$0xff] }
  0x38   :  { %1633 = vmatprep.subr.bf16.mxu1 %v1632_v37  ;;  %v184_v37 = vld [vmem:[%s3482_s1 + $0x4e8] sm:$0xff]  ;;  %v1430_v40 = vpack.c.bf16 %v175_v32, %v171_v31  ;;  %v1654_v41 = vpack.c.bf16 %v177_v35, %v173_v33  ;;  %v202_v63 = vld [vmem:[%s3482_s1 + $0x578] sm:$0xff]  ;;  %v203_v13 = vld [vmem:[%s3482_s1 + $0x580] sm:$0xff] }
  0x39   :  { %v1432_v42 = vpack.c.bf16 %v184_v37, %v180_v36  ;;  %v1664_v6 = vpack.c.bf16 %v202_v63, %v198_v62  ;;  %v204_v8 = vld [vmem:[%s3482_s1 + $0x588] sm:$0xff]  ;;  %v206_v10 = vld [vmem:[%s3482_s1 + $0x598] sm:$0xff]  ;;  %v217_v32 = vld [vmem:[%s3482_s1 + $0x5f0] sm:$0xff] }
  0x3a   :  { %1411 = vmatpush1.bf16.msra.mxu0 %v1410_v43  ;;  %v179_v43 = vld [vmem:[%s3482_s1 + $0x4c0] sm:$0xff]  ;;  %v210_v11 = vld [vmem:[%s3482_s1 + $0x5b8] sm:$0xff]  ;;  %v212_v20 = vld [vmem:[%s3482_s1 + $0x5c8] sm:$0xff] }
  0x3b   :  { %1635 = vmatpush1.bf16.msra.mxu1 %v1634_v44  ;;  %1413 = vmatprep.subr.bf16.mxu0 %v1412_v45  ;;  %v183_v44 = vld [vmem:[%s3482_s1 + $0x4e0] sm:$0xff]  ;;  %v181_v45 = vld [vmem:[%s3482_s1 + $0x4d0] sm:$0xff]  ;;  %v1668_v19 = vpack.c.bf16 %v210_v11, %v206_v10  ;;  %v216_v21 = vld [vmem:[%s3482_s1 + $0x5e8] sm:$0xff] }
  0x3c   :  { %1637 = vmatprep.subr.bf16.mxu1 %v1636_v49  ;;  %v192_v49 = vld [vmem:[%s3482_s1 + $0x528] sm:$0xff]  ;;  %v1434_v52 = vpack.c.bf16 %v183_v44, %v179_v43  ;;  %v1658_v53 = vpack.c.bf16 %v185_v47, %v181_v45  ;;  %v214_v23 = vld [vmem:[%s3482_s1 + $0x5d8] sm:$0xff]  ;;  %v1448_v27 = vpack.c.bf16 %v216_v21, %v212_v20  ;;  %v225_v44 = vld [vmem:[%s3482_s1 + $0x630] sm:$0xff] }
  0x3d   :  { %v1436_v54 = vpack.c.bf16 %v192_v49, %v188_v48  ;;  %v218_v24 = vld [vmem:[%s3482_s1 + $0x5f8] sm:$0xff]  ;;  %v220_v33 = vld [vmem:[%s3482_s1 + $0x608] sm:$0xff] }
  0x3e   :  { %1415 = vmatpush1.bf16.msra.mxu0 %v1414_v55  ;;  %v187_v55 = vld [vmem:[%s3482_s1 + $0x500] sm:$0xff]  ;;  %v1672_v31 = vpack.c.bf16 %v218_v24, %v214_v23  ;;  %v222_v35 = vld [vmem:[%s3482_s1 + $0x618] sm:$0xff]  ;;  %v228_v45 = vld [vmem:[%s3482_s1 + $0x648] sm:$0xff] }
  0x3f   :  { %1639 = vmatpush1.bf16.msra.mxu1 %v1638_v56  ;;  %1417 = vmatprep.subr.bf16.mxu0 %v1416_v57  ;;  %v191_v56 = vld [vmem:[%s3482_s1 + $0x520] sm:$0xff]  ;;  %v189_v57 = vld [vmem:[%s3482_s1 + $0x510] sm:$0xff]  ;;  %v226_v36 = vld [vmem:[%s3482_s1 + $0x638] sm:$0xff] }
  0x40   :  { %1641 = vmatprep.subr.bf16.mxu1 %v1640_v61  ;;  %v200_v61 = vld [vmem:[%s3482_s1 + $0x568] sm:$0xff]  ;;  %v1438_v0 = vpack.c.bf16 %v191_v56, %v187_v55  ;;  %v1662_v1 = vpack.c.bf16 %v193_v59, %v189_v57  ;;  %v1676_v43 = vpack.c.bf16 %v226_v36, %v222_v35  ;;  %v230_v47 = vld [vmem:[%s3482_s1 + $0x658] sm:$0xff]  ;;  %v233_v56 = vld [vmem:[%s3482_s1 + $0x670] sm:$0xff] }
  0x41   :  { %v1440_v2 = vpack.c.bf16 %v200_v61, %v196_v60  ;;  %v234_v48 = vld [vmem:[%s3482_s1 + $0x678] sm:$0xff]  ;;  %v236_v57 = vld [vmem:[%s3482_s1 + $0x688] sm:$0xff]  ;;  %v251_v24 = vld [vmem:[%s3482_s1 + $0x700] sm:$0xff] }
  0x42   :  { %1419 = vmatpush1.bf16.msra.mxu0 %v1418_v3  ;;  %v195_v3 = vld [vmem:[%s3482_s1 + $0x540] sm:$0xff]  ;;  %v1680_v55 = vpack.c.bf16 %v234_v48, %v230_v47  ;;  %v238_v59 = vld [vmem:[%s3482_s1 + $0x698] sm:$0xff] }
  0x43   :  { %1643 = vmatpush1.bf16.msra.mxu1 %v1642_v4  ;;  %1421 = vmatprep.subr.bf16.mxu0 %v1420_v5  ;;  %v199_v4 = vld [vmem:[%s3482_s1 + $0x560] sm:$0xff]  ;;  %v197_v5 = vld [vmem:[%s3482_s1 + $0x550] sm:$0xff]  ;;  %v242_v60 = vld [vmem:[%s3482_s1 + $0x6b8] sm:$0xff] }
  0x44   :  { %1645 = vmatprep.subr.bf16.mxu1 %v1644_v9  ;;  %v208_v9 = vld [vmem:[%s3482_s1 + $0x5a8] sm:$0xff]  ;;  %v1442_v12 = vpack.c.bf16 %v199_v4, %v195_v3  ;;  %v1666_v14 = vpack.c.bf16 %v201_v7, %v197_v5  ;;  %v1684_v3 = vpack.c.bf16 %v242_v60, %v238_v59  ;;  %v241_v4 = vld [vmem:[%s3482_s1 + $0x6b0] sm:$0xff]  ;;  %v246_v7 = vld [vmem:[%s3482_s1 + $0x6d8] sm:$0xff] }
  0x45   :  { %562 = vmatmul.mubr.f32.vlgmr.msra.gmra.mrb[0].mxu0 %v20_v15  ;;  %v244_v5 = vld [vmem:[%s3482_s1 + $0x6c8] sm:$0xff]  ;;  %v258_v20 = vld [vmem:[%s3482_s1 + $0x738] sm:$0xff]  ;;  %v259_v36 = vld [vmem:[%s3482_s1 + $0x740] sm:$0xff] }
  0x46   :  { %1423 = vmatpush1.bf16.msra.mxu0 %v1422_v16  ;;  %846 = vmatmul.mubr.f32.vlgmr.msra.gmra.mrb[0].mxu1 %v20_v15  ;;  %v1444_v15 = vpack.c.bf16 %v208_v9, %v204_v8  ;;  %v207_v16 = vld [vmem:[%s3482_s1 + $0x5a0] sm:$0xff]  ;;  %v250_v8 = vld [vmem:[%s3482_s1 + $0x6f8] sm:$0xff] }
  0x47   :  { %1647 = vmatpush1.bf16.msra.mxu1 %v1646_v17  ;;  %1425 = vmatprep.subr.bf16.mxu0 %v1424_v18  ;;  %v205_v17 = vld [vmem:[%s3482_s1 + $0x590] sm:$0xff]  ;;  %v1446_v25 = vpack.c.bf16 %v207_v16, %v203_v13  ;;  %v247_v13 = vld [vmem:[%s3482_s1 + $0x6e0] sm:$0xff] }
  0x48   :  { %1649 = vmatprep.subr.bf16.mxu1 %v1648_v22  ;;  %v209_v18 = vld [vmem:[%s3482_s1 + $0x5b0] sm:$0xff]  ;;  %v23_v22 = vld [vmem:[%s3483_s0 + $0x18] sm:$0xff]  ;;  %v267_v48 = vld [vmem:[%s3482_s1 + $0x780] sm:$0xff] }
  0x49   :  { %632 = vmatprep.mubr.f32.mxu0 %v23_v22  ;;  %916 = vmatprep.mubr.f32.mxu1 %v23_v22  ;;  %v1670_v26 = vpack.c.bf16 %v209_v18, %v205_v17  ;;  %v249_v16 = vld [vmem:[%s3482_s1 + $0x6f0] sm:$0xff]  ;;  %v252_v17 = vld [vmem:[%s3482_s1 + $0x708] sm:$0xff]  ;;  %v275_v60 = vld [vmem:[%s3482_s1 + $0x7c0] sm:$0xff] }
  0x4a   :  { %1427 = vmatpush1.bf16.msra.mxu0 %v1426_v28  ;;  %v211_v28 = vld [vmem:[%s3482_s1 + $0x5c0] sm:$0xff]  ;;  %v256_v18 = vld [vmem:[%s3482_s1 + $0x728] sm:$0xff] }
  0x4b   :  { %1651 = vmatpush1.bf16.msra.mxu1 %v1650_v29  ;;  %1429 = vmatprep.subr.bf16.mxu0 %v1428_v30  ;;  %v215_v29 = vld [vmem:[%s3482_s1 + $0x5e0] sm:$0xff]  ;;  %v213_v30 = vld [vmem:[%s3482_s1 + $0x5d0] sm:$0xff]  ;;  %v1468_v23 = vpack.c.bf16 %v256_v18, %v252_v17 }
  0x4c   :  { %1653 = vmatprep.subr.bf16.mxu1 %v1652_v34  ;;  %v224_v34 = vld [vmem:[%s3482_s1 + $0x628] sm:$0xff]  ;;  %v1450_v37 = vpack.c.bf16 %v215_v29, %v211_v28  ;;  %v1674_v38 = vpack.c.bf16 %v217_v32, %v213_v30  ;;  %v257_v28 = vld [vmem:[%s3482_s1 + $0x730] sm:$0xff]  ;;  %v266_v32 = vld [vmem:[%s3482_s1 + $0x778] sm:$0xff] }
  0x4d   :  { %v1452_v39 = vpack.c.bf16 %v224_v34, %v220_v33  ;;  %v260_v29 = vld [vmem:[%s3482_s1 + $0x748] sm:$0xff]  ;;  %v22_v17 = vld [vmem:[%s3483_s0 + $0x10] sm:$0xff] }
  0x4e   :  { %1431 = vmatpush1.bf16.msra.mxu0 %v1430_v40  ;;  %v219_v40 = vld [vmem:[%s3482_s1 + $0x600] sm:$0xff]  ;;  %v264_v30 = vld [vmem:[%s3482_s1 + $0x768] sm:$0xff] }
  0x4f   :  { %1655 = vmatpush1.bf16.msra.mxu1 %v1654_v41  ;;  %1433 = vmatprep.subr.bf16.mxu0 %v1432_v42  ;;  %v223_v41 = vld [vmem:[%s3482_s1 + $0x620] sm:$0xff]  ;;  %v221_v42 = vld [vmem:[%s3482_s1 + $0x610] sm:$0xff]  ;;  %v1472_v35 = vpack.c.bf16 %v264_v30, %v260_v29  ;;  %v306_v29 = vld [vmem:[%s3482_s1 + $0x8b8] sm:$0xff] }
  0x50   :  { %1657 = vmatprep.subr.bf16.mxu1 %v1656_v46  ;;  %v232_v46 = vld [vmem:[%s3482_s1 + $0x668] sm:$0xff]  ;;  %v1454_v49 = vpack.c.bf16 %v223_v41, %v219_v40  ;;  %v1678_v50 = vpack.c.bf16 %v225_v44, %v221_v42  ;;  %v265_v40 = vld [vmem:[%s3482_s1 + $0x770] sm:$0xff]  ;;  %v274_v44 = vld [vmem:[%s3482_s1 + $0x7b8] sm:$0xff] }
  0x51   :  { %v1456_v51 = vpack.c.bf16 %v232_v46, %v228_v45  ;;  %v268_v41 = vld [vmem:[%s3482_s1 + $0x788] sm:$0xff] }
  0x52   :  { %1435 = vmatpush1.bf16.msra.mxu0 %v1434_v52  ;;  %v227_v52 = vld [vmem:[%s3482_s1 + $0x640] sm:$0xff]  ;;  %v272_v42 = vld [vmem:[%s3482_s1 + $0x7a8] sm:$0xff] }
  0x53   :  { %1659 = vmatpush1.bf16.msra.mxu1 %v1658_v53  ;;  %1437 = vmatprep.subr.bf16.mxu0 %v1436_v54  ;;  %v231_v53 = vld [vmem:[%s3482_s1 + $0x660] sm:$0xff]  ;;  %v229_v54 = vld [vmem:[%s3482_s1 + $0x650] sm:$0xff]  ;;  %v1476_v47 = vpack.c.bf16 %v272_v42, %v268_v41  ;;  %v25_v30 = vld [vmem:[%s3483_s0 + $0x28] sm:$0xff] }
  0x54   :  { %1661 = vmatprep.subr.bf16.mxu1 %v1660_v58  ;;  %v240_v58 = vld [vmem:[%s3482_s1 + $0x6a8] sm:$0xff]  ;;  %v1458_v61 = vpack.c.bf16 %v231_v53, %v227_v52  ;;  %v1682_v62 = vpack.c.bf16 %v233_v56, %v229_v54  ;;  %v273_v52 = vld [vmem:[%s3482_s1 + $0x7b0] sm:$0xff]  ;;  %v282_v56 = vld [vmem:[%s3482_s1 + $0x7f8] sm:$0xff] }
  0x55   :  { %v1460_v63 = vpack.c.bf16 %v240_v58, %v236_v57  ;;  %v276_v53 = vld [vmem:[%s3482_s1 + $0x7c8] sm:$0xff]  ;;  %v310_v41 = vld [vmem:[%s3482_s1 + $0x8d8] sm:$0xff] }
  0x56   :  { %1439 = vmatpush1.bf16.msra.mxu0 %v1438_v0  ;;  %v235_v0 = vld [vmem:[%s3482_s1 + $0x680] sm:$0xff]  ;;  %v280_v54 = vld [vmem:[%s3482_s1 + $0x7e8] sm:$0xff]  ;;  %v314_v42 = vld [vmem:[%s3482_s1 + $0x8f8] sm:$0xff] }
  0x57   :  { %1663 = vmatpush1.bf16.msra.mxu1 %v1662_v1  ;;  %1441 = vmatprep.subr.bf16.mxu0 %v1440_v2  ;;  %v239_v1 = vld [vmem:[%s3482_s1 + $0x6a0] sm:$0xff]  ;;  %v237_v2 = vld [vmem:[%s3482_s1 + $0x690] sm:$0xff]  ;;  %v1480_v59 = vpack.c.bf16 %v280_v54, %v276_v53  ;;  %v318_v53 = vld [vmem:[%s3482_s1 + $0x918] sm:$0xff] }
  0x58   :  { %1665 = vmatprep.subr.bf16.mxu1 %v1664_v6  ;;  %v248_v6 = vld [vmem:[%s3482_s1 + $0x6e8] sm:$0xff]  ;;  %v1462_v9 = vpack.c.bf16 %v239_v1, %v235_v0  ;;  %v1686_v10 = vpack.c.bf16 %v241_v4, %v237_v2  ;;  %v281_v0 = vld [vmem:[%s3482_s1 + $0x7f0] sm:$0xff]  ;;  %v290_v4 = vld [vmem:[%s3482_s1 + $0x838] sm:$0xff] }
  0x59   :  { %v1464_v11 = vpack.c.bf16 %v248_v6, %v244_v5  ;;  %v284_v1 = vld [vmem:[%s3482_s1 + $0x808] sm:$0xff]  ;;  %v322_v54 = vld [vmem:[%s3482_s1 + $0x938] sm:$0xff] }
  0x5a   :  { %1443 = vmatpush1.bf16.msra.mxu0 %v1442_v12  ;;  %v243_v12 = vld [vmem:[%s3482_s1 + $0x6c0] sm:$0xff]  ;;  %v288_v2 = vld [vmem:[%s3482_s1 + $0x828] sm:$0xff] }
  0x5b   :  { %1667 = vmatpush1.bf16.msra.mxu1 %v1666_v14  ;;  %1445 = vmatprep.subr.bf16.mxu0 %v1444_v15  ;;  %v245_v14 = vld [vmem:[%s3482_s1 + $0x6d0] sm:$0xff]  ;;  %v1688_v15 = vpack.c.bf16 %v250_v8, %v246_v7  ;;  %v1466_v21 = vpack.c.bf16 %v247_v13, %v243_v12  ;;  %v1484_v7 = vpack.c.bf16 %v288_v2, %v284_v1  ;;  %v283_v8 = vld [vmem:[%s3482_s1 + $0x800] sm:$0xff]  ;;  %v292_v13 = vld [vmem:[%s3482_s1 + $0x848] sm:$0xff] }
  0x5c   :  { %1669 = vmatprep.subr.bf16.mxu1 %v1668_v19  ;;  %v254_v19 = vld [vmem:[%s3482_s1 + $0x718] sm:$0xff]  ;;  %v1690_v22 = vpack.c.bf16 %v249_v16, %v245_v14  ;;  %v289_v12 = vld [vmem:[%s3482_s1 + $0x830] sm:$0xff]  ;;  %v296_v14 = vld [vmem:[%s3482_s1 + $0x868] sm:$0xff] }
  0x5d   :  { %v298_v16 = vld [vmem:[%s3482_s1 + $0x878] sm:$0xff] }
  0x5e   :  { %1447 = vmatpush1.bf16.msra.mxu0 %v1446_v25  ;;  %v255_v25 = vld [vmem:[%s3482_s1 + $0x720] sm:$0xff]  ;;  %v326_v1 = vld [vmem:[%s3482_s1 + $0x958] sm:$0xff] }
  0x5f   :  { %1671 = vmatpush1.bf16.msra.mxu1 %v1670_v26  ;;  %1449 = vmatprep.subr.bf16.mxu0 %v1448_v27  ;;  %v253_v26 = vld [vmem:[%s3482_s1 + $0x710] sm:$0xff]  ;;  %v1692_v27 = vpack.c.bf16 %v258_v20, %v254_v19  ;;  %v1470_v33 = vpack.c.bf16 %v255_v25, %v251_v24  ;;  %v1488_v20 = vpack.c.bf16 %v296_v14, %v292_v13  ;;  %v330_v2 = vld [vmem:[%s3482_s1 + $0x978] sm:$0xff] }
  0x60   :  { %1673 = vmatprep.subr.bf16.mxu1 %v1672_v31  ;;  %v262_v31 = vld [vmem:[%s3482_s1 + $0x758] sm:$0xff]  ;;  %v1694_v34 = vpack.c.bf16 %v257_v28, %v253_v26  ;;  %v297_v25 = vld [vmem:[%s3482_s1 + $0x870] sm:$0xff]  ;;  %v300_v26 = vld [vmem:[%s3482_s1 + $0x888] sm:$0xff] }
  0x61   :  { %v302_v28 = vld [vmem:[%s3482_s1 + $0x898] sm:$0xff] }
  0x62   :  { %1451 = vmatpush1.bf16.msra.mxu0 %v1450_v37  ;;  %v263_v37 = vld [vmem:[%s3482_s1 + $0x760] sm:$0xff]  ;;  %v334_v13 = vld [vmem:[%s3482_s1 + $0x998] sm:$0xff] }
  0x63   :  { %1675 = vmatpush1.bf16.msra.mxu1 %v1674_v38  ;;  %1453 = vmatprep.subr.bf16.mxu0 %v1452_v39  ;;  %v261_v38 = vld [vmem:[%s3482_s1 + $0x750] sm:$0xff]  ;;  %v1696_v39 = vpack.c.bf16 %v266_v32, %v262_v31  ;;  %v1474_v45 = vpack.c.bf16 %v263_v37, %v259_v36  ;;  %v1716_v37 = vpack.c.bf16 %v306_v29, %v302_v28  ;;  %v338_v14 = vld [vmem:[%s3482_s1 + $0x9b8] sm:$0xff] }
  0x64   :  { %1677 = vmatprep.subr.bf16.mxu1 %v1676_v43  ;;  %v270_v43 = vld [vmem:[%s3482_s1 + $0x798] sm:$0xff]  ;;  %v1698_v46 = vpack.c.bf16 %v265_v40, %v261_v38  ;;  %v301_v36 = vld [vmem:[%s3482_s1 + $0x890] sm:$0xff]  ;;  %v312_v40 = vld [vmem:[%s3482_s1 + $0x8e8] sm:$0xff] }
  0x65   :  { %v305_v38 = vld [vmem:[%s3482_s1 + $0x8b0] sm:$0xff] }
  0x66   :  { %1455 = vmatpush1.bf16.msra.mxu0 %v1454_v49  ;;  %v271_v49 = vld [vmem:[%s3482_s1 + $0x7a0] sm:$0xff] }
  0x67   :  { %1679 = vmatpush1.bf16.msra.mxu1 %v1678_v50  ;;  %1457 = vmatprep.subr.bf16.mxu0 %v1456_v51  ;;  %v269_v50 = vld [vmem:[%s3482_s1 + $0x790] sm:$0xff]  ;;  %v1700_v51 = vpack.c.bf16 %v274_v44, %v270_v43  ;;  %v1478_v57 = vpack.c.bf16 %v271_v49, %v267_v48  ;;  %v1718_v44 = vpack.c.bf16 %v305_v38, %v301_v36  ;;  %v352_v36 = vld [vmem:[%s3482_s1 + $0xa28] sm:$0xff]  ;;  %v354_v38 = vld [vmem:[%s3482_s1 + $0xa38] sm:$0xff] }
  0x68   :  { %1681 = vmatprep.subr.bf16.mxu1 %v1680_v55  ;;  %v278_v55 = vld [vmem:[%s3482_s1 + $0x7d8] sm:$0xff]  ;;  %v1702_v58 = vpack.c.bf16 %v273_v52, %v269_v50  ;;  %v309_v48 = vld [vmem:[%s3482_s1 + $0x8d0] sm:$0xff]  ;;  %v1720_v49 = vpack.c.bf16 %v314_v42, %v310_v41  ;;  %v320_v52 = vld [vmem:[%s3482_s1 + $0x928] sm:$0xff] }
  0x69   :  { %v313_v50 = vld [vmem:[%s3482_s1 + $0x8f0] sm:$0xff]  ;;  %v347_v42 = vld [vmem:[%s3482_s1 + $0xa00] sm:$0xff] }
  0x6a   :  { %1459 = vmatpush1.bf16.msra.mxu0 %v1458_v61  ;;  %v279_v61 = vld [vmem:[%s3482_s1 + $0x7e0] sm:$0xff] }
  0x6b   :  { %1683 = vmatpush1.bf16.msra.mxu1 %v1682_v62  ;;  %1461 = vmatprep.subr.bf16.mxu0 %v1460_v63  ;;  %v277_v62 = vld [vmem:[%s3482_s1 + $0x7d0] sm:$0xff]  ;;  %v1704_v63 = vpack.c.bf16 %v282_v56, %v278_v55  ;;  %v1482_v5 = vpack.c.bf16 %v279_v61, %v275_v60  ;;  %v1722_v56 = vpack.c.bf16 %v313_v50, %v309_v48  ;;  %v360_v48 = vld [vmem:[%s3482_s1 + $0xa68] sm:$0xff]  ;;  %v362_v50 = vld [vmem:[%s3482_s1 + $0xa78] sm:$0xff] }
  0x6c   :  { %1685 = vmatprep.subr.bf16.mxu1 %v1684_v3  ;;  %v286_v3 = vld [vmem:[%s3482_s1 + $0x818] sm:$0xff]  ;;  %v1706_v6 = vpack.c.bf16 %v281_v0, %v277_v62  ;;  %v317_v60 = vld [vmem:[%s3482_s1 + $0x910] sm:$0xff]  ;;  %v1724_v61 = vpack.c.bf16 %v322_v54, %v318_v53  ;;  %v328_v0 = vld [vmem:[%s3482_s1 + $0x968] sm:$0xff] }
  0x6d   :  { %v321_v62 = vld [vmem:[%s3482_s1 + $0x930] sm:$0xff]  ;;  %v355_v54 = vld [vmem:[%s3482_s1 + $0xa40] sm:$0xff] }
  0x6e   :  { %1463 = vmatpush1.bf16.msra.mxu0 %v1462_v9  ;;  %v287_v9 = vld [vmem:[%s3482_s1 + $0x820] sm:$0xff] }
  0x6f   :  { %1687 = vmatpush1.bf16.msra.mxu1 %v1686_v10  ;;  %1465 = vmatprep.subr.bf16.mxu0 %v1464_v11  ;;  %v285_v10 = vld [vmem:[%s3482_s1 + $0x810] sm:$0xff]  ;;  %v1708_v11 = vpack.c.bf16 %v290_v4, %v286_v3  ;;  %v1486_v18 = vpack.c.bf16 %v287_v9, %v283_v8  ;;  %v1726_v4 = vpack.c.bf16 %v321_v62, %v317_v60  ;;  %v368_v60 = vld [vmem:[%s3482_s1 + $0xaa8] sm:$0xff]  ;;  %v370_v62 = vld [vmem:[%s3482_s1 + $0xab8] sm:$0xff] }
  0x70   :  { %1689 = vmatprep.subr.bf16.mxu1 %v1688_v15  ;;  %v294_v15 = vld [vmem:[%s3482_s1 + $0x858] sm:$0xff]  ;;  %v1710_v19 = vpack.c.bf16 %v289_v12, %v285_v10  ;;  %v325_v8 = vld [vmem:[%s3482_s1 + $0x950] sm:$0xff]  ;;  %v1728_v9 = vpack.c.bf16 %v330_v2, %v326_v1  ;;  %v336_v12 = vld [vmem:[%s3482_s1 + $0x9a8] sm:$0xff] }
  0x71   :  { %v1712_v24 = vpack.c.bf16 %v298_v16, %v294_v15  ;;  %v329_v10 = vld [vmem:[%s3482_s1 + $0x970] sm:$0xff]  ;;  %v363_v2 = vld [vmem:[%s3482_s1 + $0xa80] sm:$0xff] }
  0x72   :  { %1467 = vmatpush1.bf16.msra.mxu0 %v1466_v21  ;;  %v291_v21 = vld [vmem:[%s3482_s1 + $0x840] sm:$0xff]  ;;  %v1730_v16 = vpack.c.bf16 %v329_v10, %v325_v8  ;;  %v376_v8 = vld [vmem:[%s3482_s1 + $0xae8] sm:$0xff]  ;;  %v378_v10 = vld [vmem:[%s3482_s1 + $0xaf8] sm:$0xff] }
  0x73   :  { %1691 = vmatpush1.bf16.msra.mxu1 %v1690_v22  ;;  %1469 = vmatprep.subr.bf16.mxu0 %v1468_v23  ;;  %v295_v22 = vld [vmem:[%s3482_s1 + $0x860] sm:$0xff]  ;;  %v293_v23 = vld [vmem:[%s3482_s1 + $0x850] sm:$0xff] }
  0x74   :  { %1693 = vmatprep.subr.bf16.mxu1 %v1692_v27  ;;  %v304_v27 = vld [vmem:[%s3482_s1 + $0x8a8] sm:$0xff]  ;;  %v1490_v31 = vpack.c.bf16 %v295_v22, %v291_v21  ;;  %v1714_v32 = vpack.c.bf16 %v297_v25, %v293_v23  ;;  %v1732_v21 = vpack.c.bf16 %v338_v14, %v334_v13  ;;  %v337_v22 = vld [vmem:[%s3482_s1 + $0x9b0] sm:$0xff]  ;;  %v342_v25 = vld [vmem:[%s3482_s1 + $0x9d8] sm:$0xff] }
  0x75   :  { %v340_v23 = vld [vmem:[%s3482_s1 + $0x9c8] sm:$0xff]  ;;  %v371_v14 = vld [vmem:[%s3482_s1 + $0xac0] sm:$0xff] }
  0x76   :  { %1471 = vmatpush1.bf16.msra.mxu0 %v1470_v33  ;;  %v1492_v33 = vpack.c.bf16 %v304_v27, %v300_v26  ;;  %v346_v26 = vld [vmem:[%s3482_s1 + $0x9f8] sm:$0xff] }
  0x77   :  { %1695 = vmatpush1.bf16.msra.mxu1 %v1694_v34  ;;  %1473 = vmatprep.subr.bf16.mxu0 %v1472_v35  ;;  %v299_v34 = vld [vmem:[%s3482_s1 + $0x880] sm:$0xff] }
  0x78   :  { %1697 = vmatprep.subr.bf16.mxu1 %v1696_v39  ;;  %v303_v35 = vld [vmem:[%s3482_s1 + $0x8a0] sm:$0xff]  ;;  %v308_v39 = vld [vmem:[%s3482_s1 + $0x8c8] sm:$0xff] }
  0x79   :  { %v1494_v43 = vpack.c.bf16 %v303_v35, %v299_v34  ;;  %v345_v34 = vld [vmem:[%s3482_s1 + $0x9f0] sm:$0xff]  ;;  %v348_v35 = vld [vmem:[%s3482_s1 + $0xa08] sm:$0xff] }
  0x7a   :  { %1475 = vmatpush1.bf16.msra.mxu0 %v1474_v45  ;;  %v1496_v45 = vpack.c.bf16 %v312_v40, %v308_v39  ;;  %v1516_v41 = vpack.c.bf16 %v352_v36, %v348_v35 }
  0x7b   :  { %1699 = vmatpush1.bf16.msra.mxu1 %v1698_v46  ;;  %1477 = vmatprep.subr.bf16.mxu0 %v1476_v47  ;;  %v307_v46 = vld [vmem:[%s3482_s1 + $0x8c0] sm:$0xff] }
  0x7c   :  { %1701 = vmatprep.subr.bf16.mxu1 %v1700_v51  ;;  %v311_v47 = vld [vmem:[%s3482_s1 + $0x8e0] sm:$0xff]  ;;  %v316_v51 = vld [vmem:[%s3482_s1 + $0x908] sm:$0xff] }
  0x7d   :  { %v1498_v55 = vpack.c.bf16 %v311_v47, %v307_v46  ;;  %v353_v46 = vld [vmem:[%s3482_s1 + $0xa30] sm:$0xff]  ;;  %v356_v47 = vld [vmem:[%s3482_s1 + $0xa48] sm:$0xff] }
  0x7e   :  { %1479 = vmatpush1.bf16.msra.mxu0 %v1478_v57  ;;  %v1500_v57 = vpack.c.bf16 %v320_v52, %v316_v51  ;;  %v1520_v53 = vpack.c.bf16 %v360_v48, %v356_v47 }
  0x7f   :  { %1703 = vmatpush1.bf16.msra.mxu1 %v1702_v58  ;;  %1481 = vmatprep.subr.bf16.mxu0 %v1480_v59  ;;  %v315_v58 = vld [vmem:[%s3482_s1 + $0x900] sm:$0xff] }
  0x80   :  { %1705 = vmatprep.subr.bf16.mxu1 %v1704_v63  ;;  %v319_v59 = vld [vmem:[%s3482_s1 + $0x920] sm:$0xff]  ;;  %v324_v63 = vld [vmem:[%s3482_s1 + $0x948] sm:$0xff] }
  0x81   :  { %v1502_v3 = vpack.c.bf16 %v319_v59, %v315_v58  ;;  %v361_v58 = vld [vmem:[%s3482_s1 + $0xa70] sm:$0xff]  ;;  %v364_v59 = vld [vmem:[%s3482_s1 + $0xa88] sm:$0xff] }
  0x82   :  { %1483 = vmatpush1.bf16.msra.mxu0 %v1482_v5  ;;  %v1504_v5 = vpack.c.bf16 %v328_v0, %v324_v63  ;;  %v1524_v1 = vpack.c.bf16 %v368_v60, %v364_v59 }
  0x83   :  { %1707 = vmatpush1.bf16.msra.mxu1 %v1706_v6  ;;  %1485 = vmatprep.subr.bf16.mxu0 %v1484_v7  ;;  %v323_v6 = vld [vmem:[%s3482_s1 + $0x940] sm:$0xff] }
  0x84   :  { %1709 = vmatprep.subr.bf16.mxu1 %v1708_v11  ;;  %v327_v7 = vld [vmem:[%s3482_s1 + $0x960] sm:$0xff]  ;;  %v332_v11 = vld [vmem:[%s3482_s1 + $0x988] sm:$0xff] }
  0x85   :  { %633 = vmatmul.mubr.f32.vlgmr.msra.gmra.mrb[0].mxu0 %v22_v17  ;;  %v1506_v15 = vpack.c.bf16 %v327_v7, %v323_v6  ;;  %v369_v6 = vld [vmem:[%s3482_s1 + $0xab0] sm:$0xff]  ;;  %v372_v7 = vld [vmem:[%s3482_s1 + $0xac8] sm:$0xff] }
  0x86   :  { %1487 = vmatpush1.bf16.msra.mxu0 %v1486_v18  ;;  %917 = vmatmul.mubr.f32.vlgmr.msra.gmra.mrb[0].mxu1 %v22_v17  ;;  %v1508_v17 = vpack.c.bf16 %v336_v12, %v332_v11  ;;  %v331_v18 = vld [vmem:[%s3482_s1 + $0x980] sm:$0xff]  ;;  %v1528_v13 = vpack.c.bf16 %v376_v8, %v372_v7 }
  0x87   :  { %1711 = vmatpush1.bf16.msra.mxu1 %v1710_v19  ;;  %1489 = vmatprep.subr.bf16.mxu0 %v1488_v20  ;;  %v335_v19 = vld [vmem:[%s3482_s1 + $0x9a0] sm:$0xff]  ;;  %v333_v20 = vld [vmem:[%s3482_s1 + $0x990] sm:$0xff] }
  0x88   :  { %1713 = vmatprep.subr.bf16.mxu1 %v1712_v24  ;;  %703 = vmatprep.mubr.f32.mxu0 %v25_v30  ;;  %v344_v24 = vld [vmem:[%s3482_s1 + $0x9e8] sm:$0xff]  ;;  %v1510_v27 = vpack.c.bf16 %v335_v19, %v331_v18  ;;  %v1734_v28 = vpack.c.bf16 %v337_v22, %v333_v20  ;;  %v377_v18 = vld [vmem:[%s3482_s1 + $0xaf0] sm:$0xff]  ;;  %v386_v22 = vld [vmem:[%s3482_s1 + $0xb38] sm:$0xff] }
  0x89   :  { %987 = vmatprep.mubr.f32.mxu1 %v25_v30  ;;  %v1512_v29 = vpack.c.bf16 %v344_v24, %v340_v23  ;;  %v339_v30 = vld [vmem:[%s3482_s1 + $0x9c0] sm:$0xff]  ;;  %v380_v19 = vld [vmem:[%s3482_s1 + $0xb08] sm:$0xff] }
  0x8a   :  { %1491 = vmatpush1.bf16.msra.mxu0 %v1490_v31  ;;  %v343_v31 = vld [vmem:[%s3482_s1 + $0x9e0] sm:$0xff]  ;;  %v384_v20 = vld [vmem:[%s3482_s1 + $0xb28] sm:$0xff] }
  0x8b   :  { %1715 = vmatpush1.bf16.msra.mxu1 %v1714_v32  ;;  %1493 = vmatprep.subr.bf16.mxu0 %v1492_v33  ;;  %v341_v32 = vld [vmem:[%s3482_s1 + $0x9d0] sm:$0xff]  ;;  %v1736_v33 = vpack.c.bf16 %v346_v26, %v342_v25  ;;  %v1514_v39 = vpack.c.bf16 %v343_v31, %v339_v30  ;;  %v1532_v25 = vpack.c.bf16 %v384_v20, %v380_v19  ;;  %v379_v26 = vld [vmem:[%s3482_s1 + $0xb00] sm:$0xff]  ;;  %v388_v31 = vld [vmem:[%s3482_s1 + $0xb48] sm:$0xff] }
  0x8c   :  { %1717 = vmatprep.subr.bf16.mxu1 %v1716_v37  ;;  %v350_v37 = vld [vmem:[%s3482_s1 + $0xa18] sm:$0xff]  ;;  %v1738_v40 = vpack.c.bf16 %v345_v34, %v341_v32  ;;  %v385_v30 = vld [vmem:[%s3482_s1 + $0xb30] sm:$0xff]  ;;  %v392_v32 = vld [vmem:[%s3482_s1 + $0xb68] sm:$0xff] }
  0x8d   :  { %v394_v34 = vld [vmem:[%s3482_s1 + $0xb78] sm:$0xff]  ;;  %v24_v19 = vld [vmem:[%s3483_s0 + $0x20] sm:$0xff] }
  0x8e   :  { %1495 = vmatpush1.bf16.msra.mxu0 %v1494_v43  ;;  %v351_v43 = vld [vmem:[%s3482_s1 + $0xa20] sm:$0xff] }
  0x8f   :  { %1719 = vmatpush1.bf16.msra.mxu1 %v1718_v44  ;;  %1497 = vmatprep.subr.bf16.mxu0 %v1496_v45  ;;  %v349_v44 = vld [vmem:[%s3482_s1 + $0xa10] sm:$0xff]  ;;  %v1740_v45 = vpack.c.bf16 %v354_v38, %v350_v37  ;;  %v1518_v51 = vpack.c.bf16 %v351_v43, %v347_v42  ;;  %v1536_v37 = vpack.c.bf16 %v392_v32, %v388_v31  ;;  %v387_v38 = vld [vmem:[%s3482_s1 + $0xb40] sm:$0xff]  ;;  %v396_v43 = vld [vmem:[%s3482_s1 + $0xb88] sm:$0xff] }
  0x90   :  { %1721 = vmatprep.subr.bf16.mxu1 %v1720_v49  ;;  %v358_v49 = vld [vmem:[%s3482_s1 + $0xa58] sm:$0xff]  ;;  %v1742_v52 = vpack.c.bf16 %v353_v46, %v349_v44  ;;  %v393_v42 = vld [vmem:[%s3482_s1 + $0xb70] sm:$0xff]  ;;  %v400_v44 = vld [vmem:[%s3482_s1 + $0xba8] sm:$0xff] }
  0x91   :  { %v402_v46 = vld [vmem:[%s3482_s1 + $0xbb8] sm:$0xff] }
  0x92   :  { %1499 = vmatpush1.bf16.msra.mxu0 %v1498_v55  ;;  %v359_v55 = vld [vmem:[%s3482_s1 + $0xa60] sm:$0xff]  ;;  %v434_v31 = vld [vmem:[%s3482_s1 + $0xcb8] sm:$0xff] }
  0x93   :  { %1723 = vmatpush1.bf16.msra.mxu1 %v1722_v56  ;;  %1501 = vmatprep.subr.bf16.mxu0 %v1500_v57  ;;  %v357_v56 = vld [vmem:[%s3482_s1 + $0xa50] sm:$0xff]  ;;  %v1744_v57 = vpack.c.bf16 %v362_v50, %v358_v49  ;;  %v1522_v63 = vpack.c.bf16 %v359_v55, %v355_v54  ;;  %v1540_v49 = vpack.c.bf16 %v400_v44, %v396_v43  ;;  %v395_v50 = vld [vmem:[%s3482_s1 + $0xb80] sm:$0xff]  ;;  %v404_v55 = vld [vmem:[%s3482_s1 + $0xbc8] sm:$0xff] }
  0x94   :  { %1725 = vmatprep.subr.bf16.mxu1 %v1724_v61  ;;  %v366_v61 = vld [vmem:[%s3482_s1 + $0xa98] sm:$0xff]  ;;  %v1746_v0 = vpack.c.bf16 %v361_v58, %v357_v56  ;;  %v401_v54 = vld [vmem:[%s3482_s1 + $0xbb0] sm:$0xff]  ;;  %v408_v56 = vld [vmem:[%s3482_s1 + $0xbe8] sm:$0xff] }
  0x95   :  { %v410_v58 = vld [vmem:[%s3482_s1 + $0xbf8] sm:$0xff] }
  0x96   :  { %1503 = vmatpush1.bf16.msra.mxu0 %v1502_v3  ;;  %v367_v3 = vld [vmem:[%s3482_s1 + $0xaa0] sm:$0xff]  ;;  %v438_v43 = vld [vmem:[%s3482_s1 + $0xcd8] sm:$0xff] }
  0x97   :  { %1727 = vmatpush1.bf16.msra.mxu1 %v1726_v4  ;;  %1505 = vmatprep.subr.bf16.mxu0 %v1504_v5  ;;  %v365_v4 = vld [vmem:[%s3482_s1 + $0xa90] sm:$0xff]  ;;  %v1748_v5 = vpack.c.bf16 %v370_v62, %v366_v61  ;;  %v1526_v11 = vpack.c.bf16 %v367_v3, %v363_v2  ;;  %v1544_v61 = vpack.c.bf16 %v408_v56, %v404_v55  ;;  %v403_v62 = vld [vmem:[%s3482_s1 + $0xbc0] sm:$0xff]  ;;  %v412_v3 = vld [vmem:[%s3482_s1 + $0xc08] sm:$0xff] }
  0x98   :  { %1729 = vmatprep.subr.bf16.mxu1 %v1728_v9  ;;  %v374_v9 = vld [vmem:[%s3482_s1 + $0xad8] sm:$0xff]  ;;  %v1750_v12 = vpack.c.bf16 %v369_v6, %v365_v4  ;;  %v409_v2 = vld [vmem:[%s3482_s1 + $0xbf0] sm:$0xff]  ;;  %v416_v4 = vld [vmem:[%s3482_s1 + $0xc28] sm:$0xff] }
  0x99   :  { %v418_v6 = vld [vmem:[%s3482_s1 + $0xc38] sm:$0xff] }
  0x9a   :  { %1507 = vmatpush1.bf16.msra.mxu0 %v1506_v15  ;;  %v375_v15 = vld [vmem:[%s3482_s1 + $0xae0] sm:$0xff]  ;;  %v442_v44 = vld [vmem:[%s3482_s1 + $0xcf8] sm:$0xff] }
  0x9b   :  { %1731 = vmatpush1.bf16.msra.mxu1 %v1730_v16  ;;  %1509 = vmatprep.subr.bf16.mxu0 %v1508_v17  ;;  %v373_v16 = vld [vmem:[%s3482_s1 + $0xad0] sm:$0xff]  ;;  %v1752_v17 = vpack.c.bf16 %v378_v10, %v374_v9  ;;  %v1530_v23 = vpack.c.bf16 %v375_v15, %v371_v14  ;;  %v1548_v9 = vpack.c.bf16 %v416_v4, %v412_v3  ;;  %v411_v10 = vld [vmem:[%s3482_s1 + $0xc00] sm:$0xff]  ;;  %v420_v15 = vld [vmem:[%s3482_s1 + $0xc48] sm:$0xff] }
  0x9c   :  { %1733 = vmatprep.subr.bf16.mxu1 %v1732_v21  ;;  %v382_v21 = vld [vmem:[%s3482_s1 + $0xb18] sm:$0xff]  ;;  %v1754_v24 = vpack.c.bf16 %v377_v18, %v373_v16  ;;  %v417_v14 = vld [vmem:[%s3482_s1 + $0xc30] sm:$0xff]  ;;  %v424_v16 = vld [vmem:[%s3482_s1 + $0xc68] sm:$0xff] }
  0x9d   :  { %v426_v18 = vld [vmem:[%s3482_s1 + $0xc78] sm:$0xff] }
  0x9e   :  { %1511 = vmatpush1.bf16.msra.mxu0 %v1510_v27  ;;  %v383_v27 = vld [vmem:[%s3482_s1 + $0xb20] sm:$0xff]  ;;  %v446_v55 = vld [vmem:[%s3482_s1 + $0xd18] sm:$0xff] }
  0x9f   :  { %1735 = vmatpush1.bf16.msra.mxu1 %v1734_v28  ;;  %1513 = vmatprep.subr.bf16.mxu0 %v1512_v29  ;;  %v381_v28 = vld [vmem:[%s3482_s1 + $0xb10] sm:$0xff]  ;;  %v1756_v29 = vpack.c.bf16 %v386_v22, %v382_v21  ;;  %v1534_v35 = vpack.c.bf16 %v383_v27, %v379_v26  ;;  %v1552_v22 = vpack.c.bf16 %v424_v16, %v420_v15  ;;  %v450_v56 = vld [vmem:[%s3482_s1 + $0xd38] sm:$0xff] }
  0xa0   :  { %1737 = vmatprep.subr.bf16.mxu1 %v1736_v33  ;;  %v390_v33 = vld [vmem:[%s3482_s1 + $0xb58] sm:$0xff]  ;;  %v1758_v36 = vpack.c.bf16 %v385_v30, %v381_v28  ;;  %v425_v27 = vld [vmem:[%s3482_s1 + $0xc70] sm:$0xff]  ;;  %v428_v28 = vld [vmem:[%s3482_s1 + $0xc88] sm:$0xff] }
  0xa1   :  { %v430_v30 = vld [vmem:[%s3482_s1 + $0xc98] sm:$0xff] }
  0xa2   :  { %1515 = vmatpush1.bf16.msra.mxu0 %v1514_v39  ;;  %v391_v39 = vld [vmem:[%s3482_s1 + $0xb60] sm:$0xff]  ;;  %v454_v3 = vld [vmem:[%s3482_s1 + $0xd58] sm:$0xff] }
  0xa3   :  { %1739 = vmatpush1.bf16.msra.mxu1 %v1738_v40  ;;  %1517 = vmatprep.subr.bf16.mxu0 %v1516_v41  ;;  %v389_v40 = vld [vmem:[%s3482_s1 + $0xb50] sm:$0xff]  ;;  %v1760_v41 = vpack.c.bf16 %v394_v34, %v390_v33  ;;  %v1538_v47 = vpack.c.bf16 %v391_v39, %v387_v38  ;;  %v1780_v38 = vpack.c.bf16 %v434_v31, %v430_v30  ;;  %v458_v4 = vld [vmem:[%s3482_s1 + $0xd78] sm:$0xff] }
  0xa4   :  { %1741 = vmatprep.subr.bf16.mxu1 %v1740_v45  ;;  %v398_v45 = vld [vmem:[%s3482_s1 + $0xb98] sm:$0xff]  ;;  %v1762_v48 = vpack.c.bf16 %v393_v42, %v389_v40  ;;  %v433_v39 = vld [vmem:[%s3482_s1 + $0xcb0] sm:$0xff]  ;;  %v436_v40 = vld [vmem:[%s3482_s1 + $0xcc8] sm:$0xff]  ;;  %v1885_v42 = vmov 0.0  }
  0xa5   :  { %v462_v15 = vld [vmem:[%s3482_s1 + $0xd98] sm:$0xff] }
  0xa6   :  { %1519 = vmatpush1.bf16.msra.mxu0 %v1518_v51  ;;  %v399_v51 = vld [vmem:[%s3482_s1 + $0xba0] sm:$0xff]  ;;  %v466_v16 = vld [vmem:[%s3482_s1 + $0xdb8] sm:$0xff] }
  0xa7   :  { %1743 = vmatpush1.bf16.msra.mxu1 %v1742_v52  ;;  %1521 = vmatprep.subr.bf16.mxu0 %v1520_v53  ;;  %v397_v52 = vld [vmem:[%s3482_s1 + $0xb90] sm:$0xff]  ;;  %v1764_v53 = vpack.c.bf16 %v402_v46, %v398_v45  ;;  %v1542_v59 = vpack.c.bf16 %v399_v51, %v395_v50  ;;  %v1784_v51 = vpack.c.bf16 %v442_v44, %v438_v43  ;;  %v1069_v44 = vld [vmem:[%s3484_s3] sm:$0xff] }
  0xa8   :  { %1745 = vmatprep.subr.bf16.mxu1 %v1744_v57  ;;  %v406_v57 = vld [vmem:[%s3482_s1 + $0xbd8] sm:$0xff]  ;;  %v1766_v60 = vpack.c.bf16 %v401_v54, %v397_v52  ;;  %v437_v50 = vld [vmem:[%s3482_s1 + $0xcd0] sm:$0xff]  ;;  %v448_v54 = vld [vmem:[%s3482_s1 + $0xd28] sm:$0xff] }
  0xa9   :  { %v441_v52 = vld [vmem:[%s3482_s1 + $0xcf0] sm:$0xff] }
  0xaa   :  { %1523 = vmatpush1.bf16.msra.mxu0 %v1522_v63  ;;  %v407_v63 = vld [vmem:[%s3482_s1 + $0xbe0] sm:$0xff] }
  0xab   :  { %1747 = vmatpush1.bf16.msra.mxu1 %v1746_v0  ;;  %1525 = vmatprep.subr.bf16.mxu0 %v1524_v1  ;;  %v405_v0 = vld [vmem:[%s3482_s1 + $0xbd0] sm:$0xff]  ;;  %v1768_v1 = vpack.c.bf16 %v410_v58, %v406_v57  ;;  %v1546_v7 = vpack.c.bf16 %v407_v63, %v403_v62  ;;  %v1786_v58 = vpack.c.bf16 %v441_v52, %v437_v50  ;;  %v1088_v50 = vld [vmem:[%s3484_s3 + $0x98] sm:$0xff] }
  0xac   :  { %1749 = vmatprep.subr.bf16.mxu1 %v1748_v5  ;;  %v414_v5 = vld [vmem:[%s3482_s1 + $0xc18] sm:$0xff]  ;;  %v1770_v8 = vpack.c.bf16 %v409_v2, %v405_v0  ;;  %v445_v62 = vld [vmem:[%s3482_s1 + $0xd10] sm:$0xff]  ;;  %v1788_v63 = vpack.c.bf16 %v450_v56, %v446_v55  ;;  %v456_v2 = vld [vmem:[%s3482_s1 + $0xd68] sm:$0xff] }
  0xad   :  { %v449_v0 = vld [vmem:[%s3482_s1 + $0xd30] sm:$0xff]  ;;  %v1120_v52 = vld [vmem:[%s3484_s3 + $0x198] sm:$0xff] }
  0xae   :  { %1527 = vmatpush1.bf16.msra.mxu0 %v1526_v11  ;;  %v415_v11 = vld [vmem:[%s3482_s1 + $0xc20] sm:$0xff] }
  0xaf   :  { %1751 = vmatpush1.bf16.msra.mxu1 %v1750_v12  ;;  %1529 = vmatprep.subr.bf16.mxu0 %v1528_v13  ;;  %v413_v12 = vld [vmem:[%s3482_s1 + $0xc10] sm:$0xff]  ;;  %v1772_v13 = vpack.c.bf16 %v418_v6, %v414_v5  ;;  %v1550_v20 = vpack.c.bf16 %v415_v11, %v411_v10  ;;  %v1790_v6 = vpack.c.bf16 %v449_v0, %v445_v62  ;;  %v1089_v62 = vld [vmem:[%s3484_s3 + $0xa0] sm:$0xff] }
  0xb0   :  { %1753 = vmatprep.subr.bf16.mxu1 %v1752_v17  ;;  %v422_v17 = vld [vmem:[%s3482_s1 + $0xc58] sm:$0xff]  ;;  %v1774_v21 = vpack.c.bf16 %v417_v14, %v413_v12  ;;  %v453_v10 = vld [vmem:[%s3482_s1 + $0xd50] sm:$0xff]  ;;  %v1792_v11 = vpack.c.bf16 %v458_v4, %v454_v3  ;;  %v464_v14 = vld [vmem:[%s3482_s1 + $0xda8] sm:$0xff] }
  0xb1   :  { %v1776_v26 = vpack.c.bf16 %v426_v18, %v422_v17  ;;  %v457_v12 = vld [vmem:[%s3482_s1 + $0xd70] sm:$0xff]  ;;  %v1121_v0 = vld [vmem:[%s3484_s3 + $0x1a0] sm:$0xff] }
  0xb2   :  { %1531 = vmatpush1.bf16.msra.mxu0 %v1530_v23  ;;  %v419_v23 = vld [vmem:[%s3482_s1 + $0xc40] sm:$0xff]  ;;  %v1794_v18 = vpack.c.bf16 %v457_v12, %v453_v10  ;;  %v1091_v10 = vld [vmem:[%s3484_s3 + $0xb0] sm:$0xff] }
  0xb3   :  { %1755 = vmatpush1.bf16.msra.mxu1 %v1754_v24  ;;  %1533 = vmatprep.subr.bf16.mxu0 %v1532_v25  ;;  %v423_v24 = vld [vmem:[%s3482_s1 + $0xc60] sm:$0xff]  ;;  %v421_v25 = vld [vmem:[%s3482_s1 + $0xc50] sm:$0xff] }
  0xb4   :  { %1757 = vmatprep.subr.bf16.mxu1 %v1756_v29  ;;  %v432_v29 = vld [vmem:[%s3482_s1 + $0xca8] sm:$0xff]  ;;  %v1554_v32 = vpack.c.bf16 %v423_v24, %v419_v23  ;;  %v1778_v33 = vpack.c.bf16 %v425_v27, %v421_v25  ;;  %v1796_v23 = vpack.c.bf16 %v466_v16, %v462_v15  ;;  %v465_v24 = vld [vmem:[%s3482_s1 + $0xdb0] sm:$0xff]  ;;  %v470_v27 = vld [vmem:[%s3482_s1 + $0xdd8] sm:$0xff] }
  0xb5   :  { %v1556_v34 = vpack.c.bf16 %v432_v29, %v428_v28  ;;  %v468_v25 = vld [vmem:[%s3482_s1 + $0xdc8] sm:$0xff]  ;;  %v474_v28 = vld [vmem:[%s3482_s1 + $0xdf8] sm:$0xff]  ;;  %v1123_v12 = vld [vmem:[%s3484_s3 + $0x1b0] sm:$0xff] }
  0xb6   :  { %1535 = vmatpush1.bf16.msra.mxu0 %v1534_v35  ;;  %v427_v35 = vld [vmem:[%s3482_s1 + $0xc80] sm:$0xff] }
  0xb7   :  { %1759 = vmatpush1.bf16.msra.mxu1 %v1758_v36  ;;  %1537 = vmatprep.subr.bf16.mxu0 %v1536_v37  ;;  %v431_v36 = vld [vmem:[%s3482_s1 + $0xca0] sm:$0xff]  ;;  %v429_v37 = vld [vmem:[%s3482_s1 + $0xc90] sm:$0xff] }
  0xb8   :  { %1761 = vmatprep.subr.bf16.mxu1 %v1760_v41  ;;  %v440_v41 = vld [vmem:[%s3482_s1 + $0xce8] sm:$0xff]  ;;  %v1558_v45 = vpack.c.bf16 %v431_v36, %v427_v35  ;;  %v1782_v46 = vpack.c.bf16 %v433_v39, %v429_v37  ;;  %v1800_v35 = vpack.c.bf16 %v474_v28, %v470_v27  ;;  %v473_v36 = vld [vmem:[%s3482_s1 + $0xdf0] sm:$0xff]  ;;  %v1085_v37 = vld [vmem:[%s3484_s3 + $0x80] sm:$0xff] }
  0xb9   :  { %v1117_v39 = vld [vmem:[%s3484_s3 + $0x180] sm:$0xff] }
  0xba   :  { %1539 = vmatpush1.bf16.msra.mxu0 %v1538_v47  ;;  %v1560_v47 = vpack.c.bf16 %v440_v41, %v436_v40  ;;  %v1118_v40 = vld [vmem:[%s3484_s3 + $0x188] sm:$0xff] }
  0xbb   :  { %1763 = vmatpush1.bf16.msra.mxu1 %v1762_v48  ;;  %1541 = vmatprep.subr.bf16.mxu0 %v1540_v49  ;;  %v435_v48 = vld [vmem:[%s3482_s1 + $0xcc0] sm:$0xff] }
  0xbc   :  { %1765 = vmatprep.subr.bf16.mxu1 %v1764_v53  ;;  %v439_v49 = vld [vmem:[%s3482_s1 + $0xce0] sm:$0xff]  ;;  %v444_v53 = vld [vmem:[%s3482_s1 + $0xd08] sm:$0xff] }
  0xbd   :  { %v1562_v57 = vpack.c.bf16 %v439_v49, %v435_v48  ;;  %v1102_v48 = vld [vmem:[%s3484_s3 + $0x108] sm:$0xff]  ;;  %v1087_v49 = vld [vmem:[%s3484_s3 + $0x90] sm:$0xff] }
  0xbe   :  { %1543 = vmatpush1.bf16.msra.mxu0 %v1542_v59  ;;  %v1564_v59 = vpack.c.bf16 %v448_v54, %v444_v53  ;;  %v26_v53 = vld [vmem:[%s3483_s0 + $0x30] sm:$0xff]  ;;  %v1808_v56 = vpack.c.bf16 %v1088_v50, %v1087_v49  ;;  %v1130_v49 = vld [vmem:[%s3484_s3 + $0x1e8] sm:$0xff] }
  0xbf   :  { %1767 = vmatpush1.bf16.msra.mxu1 %v1766_v60  ;;  %1545 = vmatprep.subr.bf16.mxu0 %v1544_v61  ;;  %v443_v60 = vld [vmem:[%s3482_s1 + $0xd00] sm:$0xff] }
  0xc0   :  { %1769 = vmatprep.subr.bf16.mxu1 %v1768_v1  ;;  %v447_v61 = vld [vmem:[%s3482_s1 + $0xd20] sm:$0xff]  ;;  %v452_v1 = vld [vmem:[%s3482_s1 + $0xd48] sm:$0xff] }
  0xc1   :  { %v1566_v5 = vpack.c.bf16 %v447_v61, %v443_v60  ;;  %v1104_v61 = vld [vmem:[%s3484_s3 + $0x118] sm:$0xff] }
  0xc2   :  { %1547 = vmatpush1.bf16.msra.mxu0 %v1546_v7  ;;  %v1568_v7 = vpack.c.bf16 %v456_v2, %v452_v1  ;;  %v1122_v1 = vld [vmem:[%s3484_s3 + $0x1a8] sm:$0xff] }
  0xc3   :  { %1771 = vmatpush1.bf16.msra.mxu1 %v1770_v8  ;;  %1549 = vmatprep.subr.bf16.mxu0 %v1548_v9  ;;  %v451_v8 = vld [vmem:[%s3482_s1 + $0xd40] sm:$0xff] }
  0xc4   :  { %1773 = vmatprep.subr.bf16.mxu1 %v1772_v13  ;;  %v455_v9 = vld [vmem:[%s3482_s1 + $0xd60] sm:$0xff]  ;;  %v460_v13 = vld [vmem:[%s3482_s1 + $0xd88] sm:$0xff] }
  0xc5   :  { %704 = vmatmul.mubr.f32.vlgmr.msra.gmra.mrb[0].mxu0 %v24_v19  ;;  %v1570_v17 = vpack.c.bf16 %v455_v9, %v451_v8  ;;  %v1844_v8 = vpack.c.bf16 %v1122_v1, %v1121_v0  ;;  %v1106_v9 = vld [vmem:[%s3484_s3 + $0x128] sm:$0xff]  ;;  %v1132_v0 = vld [vmem:[%s3484_s3 + $0x1f8] sm:$0xff]  ;;  %v1083_v1 = vld [vmem:[%s3484_s3 + $0x70] sm:$0xff] }
  0xc6   :  { %1551 = vmatpush1.bf16.msra.mxu0 %v1550_v20  ;;  %988 = vmatmul.mubr.f32.vlgmr.msra.gmra.mrb[0].mxu1 %v24_v19  ;;  %v1572_v19 = vpack.c.bf16 %v464_v14, %v460_v13  ;;  %v459_v20 = vld [vmem:[%s3482_s1 + $0xd80] sm:$0xff]  ;;  %v1124_v13 = vld [vmem:[%s3484_s3 + $0x1b8] sm:$0xff] }
  0xc7   :  { %1775 = vmatpush1.bf16.msra.mxu1 %v1774_v21  ;;  %1553 = vmatprep.subr.bf16.mxu0 %v1552_v22  ;;  %v463_v21 = vld [vmem:[%s3482_s1 + $0xda0] sm:$0xff]  ;;  %v461_v22 = vld [vmem:[%s3482_s1 + $0xd90] sm:$0xff] }
  0xc8   :  { %1777 = vmatprep.subr.bf16.mxu1 %v1776_v26  ;;  %774 = vmatprep.mubr.f32.mxu0 %v1885_v42  ;;  %v472_v26 = vld [vmem:[%s3482_s1 + $0xde8] sm:$0xff]  ;;  %v1574_v29 = vpack.c.bf16 %v463_v21, %v459_v20  ;;  %v1798_v30 = vpack.c.bf16 %v465_v24, %v461_v22  ;;  %v1848_v20 = vpack.c.bf16 %v1124_v13, %v1123_v12  ;;  %v1108_v21 = vld [vmem:[%s3484_s3 + $0x138] sm:$0xff]  ;;  %v1093_v22 = vld [vmem:[%s3484_s3 + $0xc0] sm:$0xff] }
  0xc9   :  { %1058 = vmatprep.mubr.f32.mxu1 %v1885_v42  ;;  %v1576_v31 = vpack.c.bf16 %v472_v26, %v468_v25  ;;  %v1125_v24 = vld [vmem:[%s3484_s3 + $0x1c0] sm:$0xff]  ;;  %v1126_v25 = vld [vmem:[%s3484_s3 + $0x1c8] sm:$0xff] }
  0xca   :  { %1555 = vmatpush1.bf16.msra.mxu0 %v1554_v32  ;;  %v467_v32 = vld [vmem:[%s3482_s1 + $0xdc0] sm:$0xff] }
  0xcb   :  { %1779 = vmatpush1.bf16.msra.mxu1 %v1778_v33  ;;  %1557 = vmatprep.subr.bf16.mxu0 %v1556_v34  ;;  %v471_v33 = vld [vmem:[%s3482_s1 + $0xde0] sm:$0xff]  ;;  %v469_v34 = vld [vmem:[%s3482_s1 + $0xdd0] sm:$0xff] }
  0xcc   :  { %1781 = vmatprep.subr.bf16.mxu1 %v1780_v38  ;;  %v1086_v38 = vld [vmem:[%s3484_s3 + $0x88] sm:$0xff]  ;;  %v1578_v41 = vpack.c.bf16 %v471_v33, %v467_v32  ;;  %v1802_v42 = vpack.c.bf16 %v473_v36, %v469_v34  ;;  %v1852_v32 = vpack.c.bf16 %v1126_v25, %v1125_v24  ;;  %v1095_v34 = vld [vmem:[%s3484_s3 + $0xd0] sm:$0xff] }
  0xcd   :  { %v1804_v43 = vpack.c.bf16 %v1086_v38, %v1085_v37  ;;  %v1110_v33 = vld [vmem:[%s3484_s3 + $0x148] sm:$0xff]  ;;  %v1127_v36 = vld [vmem:[%s3484_s3 + $0x1d0] sm:$0xff]  ;;  %v1128_v37 = vld [vmem:[%s3484_s3 + $0x1d8] sm:$0xff] }
  0xce   :  { %1559 = vmatpush1.bf16.msra.mxu0 %v1558_v45  ;;  %v1070_v45 = vld [vmem:[%s3484_s3 + $0x8] sm:$0xff] }
  0xcf   :  { %1783 = vmatpush1.bf16.msra.mxu1 %v1782_v46  ;;  %1561 = vmatprep.subr.bf16.mxu0 %v1560_v47  ;;  %v1101_v46 = vld [vmem:[%s3484_s3 + $0x100] sm:$0xff]  ;;  %v1836_v47 = vpack.c.bf16 %v1118_v40, %v1117_v39  ;;  %v1806_v54 = vpack.c.bf16 %v1070_v45, %v1069_v44  ;;  %v1856_v44 = vpack.c.bf16 %v1128_v37, %v1127_v36  ;;  %v1112_v45 = vld [vmem:[%s3484_s3 + $0x158] sm:$0xff] }
  0xd0   :  { %1785 = vmatprep.subr.bf16.mxu1 %v1784_v51  ;;  %v1119_v51 = vld [vmem:[%s3484_s3 + $0x190] sm:$0xff]  ;;  %v1838_v55 = vpack.c.bf16 %v1102_v48, %v1101_v46  ;;  %v1097_v46 = vld [vmem:[%s3484_s3 + $0xe0] sm:$0xff] }
  0xd1   :  { %v1840_v60 = vpack.c.bf16 %v1120_v52, %v1119_v51  ;;  %v1129_v48 = vld [vmem:[%s3484_s3 + $0x1e0] sm:$0xff] }
  0xd2   :  { %1563 = vmatpush1.bf16.msra.mxu0 %v1562_v57  ;;  %v1071_v57 = vld [vmem:[%s3484_s3 + $0x10] sm:$0xff] }
  0xd3   :  { %1787 = vmatpush1.bf16.msra.mxu1 %v1786_v58  ;;  %1565 = vmatprep.subr.bf16.mxu0 %v1564_v59  ;;  %v1072_v58 = vld [vmem:[%s3484_s3 + $0x18] sm:$0xff]  ;;  %v1103_v59 = vld [vmem:[%s3484_s3 + $0x110] sm:$0xff] }
  0xd4   :  { %1789 = vmatprep.subr.bf16.mxu1 %v1788_v63  ;;  %v1090_v63 = vld [vmem:[%s3484_s3 + $0xa8] sm:$0xff]  ;;  %v1810_v2 = vpack.c.bf16 %v1072_v58, %v1071_v57  ;;  %v1842_v3 = vpack.c.bf16 %v1104_v61, %v1103_v59  ;;  %v1100_v61 = vld [vmem:[%s3484_s3 + $0xf8] sm:$0xff] }
  0xd5   :  { %v1812_v4 = vpack.c.bf16 %v1090_v63, %v1089_v62  ;;  %v1114_v58 = vld [vmem:[%s3484_s3 + $0x168] sm:$0xff]  ;;  %v1131_v62 = vld [vmem:[%s3484_s3 + $0x1f0] sm:$0xff] }
  0xd6   :  { %1567 = vmatpush1.bf16.msra.mxu0 %v1566_v5  ;;  %v1073_v5 = vld [vmem:[%s3484_s3 + $0x20] sm:$0xff] }
  0xd7   :  { %1791 = vmatpush1.bf16.msra.mxu1 %v1790_v6  ;;  %1569 = vmatprep.subr.bf16.mxu0 %v1568_v7  ;;  %v1074_v6 = vld [vmem:[%s3484_s3 + $0x28] sm:$0xff]  ;;  %v1105_v7 = vld [vmem:[%s3484_s3 + $0x120] sm:$0xff] }
  0xd8   :  { %1793 = vmatprep.subr.bf16.mxu1 %v1792_v11  ;;  %v1092_v11 = vld [vmem:[%s3484_s3 + $0xb8] sm:$0xff]  ;;  %v1814_v14 = vpack.c.bf16 %v1074_v6, %v1073_v5  ;;  %v1846_v15 = vpack.c.bf16 %v1106_v9, %v1105_v7  ;;  %v1115_v5 = vld [vmem:[%s3484_s3 + $0x170] sm:$0xff] }
  0xd9   :  { %v1816_v16 = vpack.c.bf16 %v1092_v11, %v1091_v10  ;;  %v1116_v6 = vld [vmem:[%s3484_s3 + $0x178] sm:$0xff]  ;;  %v475_v11 = vld [vmem:[%s3485_s2] sm:$0xf] }
  0xda   :  { %1571 = vmatpush1.bf16.msra.mxu0 %v1570_v17  ;;  %v1075_v17 = vld [vmem:[%s3484_s3 + $0x30] sm:$0xff]  ;;  %v1866_v7 = vpack.c.bf16 %v1116_v6, %v1115_v5 }
  0xdb   :  { %1795 = vmatpush1.bf16.msra.mxu1 %v1794_v18  ;;  %1573 = vmatprep.subr.bf16.mxu0 %v1572_v19  ;;  %v1076_v18 = vld [vmem:[%s3484_s3 + $0x38] sm:$0xff]  ;;  %v1107_v19 = vld [vmem:[%s3484_s3 + $0x130] sm:$0xff] }
  0xdc   :  { %1797 = vmatprep.subr.bf16.mxu1 %v1796_v23  ;;  %v1094_v23 = vld [vmem:[%s3484_s3 + $0xc8] sm:$0xff]  ;;  %v1818_v26 = vpack.c.bf16 %v1076_v18, %v1075_v17  ;;  %v1850_v27 = vpack.c.bf16 %v1108_v21, %v1107_v19 }
  0xdd   :  { %v1820_v28 = vpack.c.bf16 %v1094_v23, %v1093_v22 }
  0xde   :  { %1575 = vmatpush1.bf16.msra.mxu0 %v1574_v29  ;;  %v1077_v29 = vld [vmem:[%s3484_s3 + $0x40] sm:$0xff] }
  0xdf   :  { %1799 = vmatpush1.bf16.msra.mxu1 %v1798_v30  ;;  %1577 = vmatprep.subr.bf16.mxu0 %v1576_v31  ;;  %v1078_v30 = vld [vmem:[%s3484_s3 + $0x48] sm:$0xff]  ;;  %v1109_v31 = vld [vmem:[%s3484_s3 + $0x140] sm:$0xff] }
  0xe0   :  { %1801 = vmatprep.subr.bf16.mxu1 %v1800_v35  ;;  %v1096_v35 = vld [vmem:[%s3484_s3 + $0xd8] sm:$0xff]  ;;  %v1822_v38 = vpack.c.bf16 %v1078_v30, %v1077_v29  ;;  %v1854_v39 = vpack.c.bf16 %v1110_v33, %v1109_v31  ;;  %v1285_v33 = vld [vmem:[%s3486_s4] ss:$0 sm:$0xff] }
  0xe1   :  { %v1824_v40 = vpack.c.bf16 %v1096_v35, %v1095_v34 }
  0xe2   :  { %1579 = vmatpush1.bf16.msra.mxu0 %v1578_v41  ;;  %v1079_v41 = vld [vmem:[%s3484_s3 + $0x50] sm:$0xff] }
  0xe3   :  { %1803 = vmatpush1.bf16.msra.mxu1 %v1802_v42  ;;  %1805 = vmatprep.subr.bf16.mxu0 %v1804_v43  ;;  %v1080_v42 = vld [vmem:[%s3484_s3 + $0x58] sm:$0xff]  ;;  %v1111_v43 = vld [vmem:[%s3484_s3 + $0x150] sm:$0xff] }
  0xe4   :  { %1837 = vmatprep.subr.bf16.mxu1 %v1836_v47  ;;  %v1098_v47 = vld [vmem:[%s3484_s3 + $0xe8] sm:$0xff]  ;;  %v1826_v50 = vpack.c.bf16 %v1080_v42, %v1079_v41  ;;  %v1858_v51 = vpack.c.bf16 %v1112_v45, %v1111_v43 }
  0xe5   :  { %775 = vmatmul.mubr.f32.vlgmr.msra.gmra.mrb[0].mxu0 %v26_v53  ;;  %v1828_v52 = vpack.c.bf16 %v1098_v47, %v1097_v46 }
  0xe6   :  { %1059 = vmatmul.mubr.f32.vlgmr.msra.gmra.mrb[0].mxu1 %v26_v53  ;;  %1807 = vmatpush3.bf16.msra.mxu0 %v1806_v54  ;;  %v1860_v53 = vpack.c.bf16 %v1130_v49, %v1129_v48  ;;  %v1081_v54 = vld [vmem:[%s3484_s3 + $0x60] sm:$0xff] }
  0xe7   :  { %1839 = vmatpush3.bf16.msra.mxu1 %v1838_v55  ;;  %1809 = vmatprep.subr.bf16.mxu0 %v1808_v56  ;;  %v1082_v55 = vld [vmem:[%s3484_s3 + $0x68] sm:$0xff]  ;;  %v1113_v56 = vld [vmem:[%s3484_s3 + $0x160] sm:$0xff] }
  0xe8   :  { %1841 = vmatprep.subr.bf16.mxu1 %v1840_v60  ;;  %v1830_v57 = vpack.c.bf16 %v1082_v55, %v1081_v54  ;;  %v1862_v59 = vpack.c.bf16 %v1114_v58, %v1113_v56  ;;  %v1099_v60 = vld [vmem:[%s3484_s3 + $0xf0] sm:$0xff] }
  0xe9   :  { %v1832_v63 = vpack.c.bf16 %v1100_v61, %v1099_v60 }
  0xea   :  { %1811 = vmatpush3.bf16.msra.mxu0 %v1810_v2  ;;  %v1084_v2 = vld [vmem:[%s3484_s3 + $0x78] sm:$0xff] }
  0xeb   :  { %1843 = vmatpush3.bf16.msra.mxu1 %v1842_v3  ;;  %1813 = vmatprep.subr.bf16.mxu0 %v1812_v4  ;;  %v1864_v3 = vpack.c.bf16 %v1132_v0, %v1131_v62  ;;  %v1834_v4 = vpack.c.bf16 %v1084_v2, %v1083_v1 }
  0xec   :  { %1845 = vmatprep.subr.bf16.mxu1 %v1844_v8  ;;  %v477_v8 = vlaneseq }
  0xee   :  { %1815 = vmatpush3.bf16.msra.mxu0 %v1814_v14  ;;  %v478_v9 = vshrl.u32 %v477_v8, 7 }
  0xef   :  { %1847 = vmatpush3.bf16.msra.mxu1 %v1846_v15  ;;  %1817 = vmatprep.subr.bf16.mxu0 %v1816_v16 }
  0xf0   :  { %1849 = vmatprep.subr.bf16.mxu1 %v1848_v20  ;;  %v479_v10 = vsub.s32 0, %v478_v9  ;;  %v487_v12 = vsub.s32 2, %v478_v9  ;;  %v483_v13 = vsub.s32 1, %v478_v9  ;;  %v491_v14 = vsub.s32 3, %v478_v9 }
  0xf2   :  { %1819 = vmatpush3.bf16.msra.mxu0 %v1818_v26  ;;  %v480_v15 = vrot.slane %v475_v11, %v479_v10  ;;  %v488_v16 = vrot.slane %v475_v11, %v487_v12  ;;  %v484_v17 = vrot.slane %v475_v11, %v483_v13  ;;  %v492_v18 = vrot.slane %v475_v11, %v491_v14 }
  0xf3   :  { %1851 = vmatpush3.bf16.msra.mxu1 %v1850_v27  ;;  %1821 = vmatprep.subr.bf16.mxu0 %v1820_v28 }
  0xf4   :  { %1853 = vmatprep.subr.bf16.mxu1 %v1852_v32 }
  0xf6   :  { %1823 = vmatpush3.bf16.msra.mxu0 %v1822_v38 }
  0xf7   :  { %1855 = vmatpush3.bf16.msra.mxu1 %v1854_v39  ;;  %1825 = vmatprep.subr.bf16.mxu0 %v1824_v40 }
  0xf8   :  { %1857 = vmatprep.subr.bf16.mxu1 %v1856_v44 }
  0xfa   :  { %1827 = vmatpush3.bf16.msra.mxu0 %v1826_v50 }
  0xfb   :  { %1859 = vmatpush3.bf16.msra.mxu1 %v1858_v51  ;;  %1829 = vmatprep.subr.bf16.mxu0 %v1828_v52 }
  0xfc   :  { %1861 = vmatprep.subr.bf16.mxu1 %v1860_v53 }
  0xfe   :  { %1831 = vmatpush3.bf16.msra.mxu0 %v1830_v57 }
  0xff   :  { %1863 = vmatpush3.bf16.msra.mxu1 %v1862_v59  ;;  %1833 = vmatprep.subr.bf16.mxu0 %v1832_v63 }
 0x100   :  { %1865 = vmatprep.subr.bf16.mxu1 %v1864_v3 }
 0x102   :  { %1835 = vmatpush3.bf16.msra.mxu0 %v1834_v4 }
 0x103   :  { %1867 = vmatpush3.bf16.msra.mxu1 %v1866_v7 }
 0x1b8   :  { %v776_v19 = vpop.f32.mrb[0].mxu0 }
 0x1b9   :  { %v1868_v20 = vadd.f32 %v776_v19, %v480_v15  ;;  %v1060_v21 = vpop.f32.mrb[0].mxu1  ;;  %v778_v22 = vpop.f32.mrb[1].mxu0 }
 0x1ba   :  { %v1870_v23 = vadd.f32 %v1060_v21, %v488_v16  ;;  %v1869_v24 = vadd.f32 %v778_v22, %v484_v17  ;;  %v1062_v25 = vpop.f32.mrb[1].mxu1 }
 0x1bb   :  { %v1871_v26 = vadd.f32 %v1062_v25, %v492_v18  ;;  %v1065_v28 = vmax.f32 %v1868_v20, 0.0 }
 0x1bc   :  { %v1066_v27 = vmax.f32 %v1869_v24, 0.0  ;;  %v1067_v30 = vmax.f32 %v1870_v23, 0.0 }
 0x1bd   :  { %v1068_v29 = vmax.f32 %v1871_v26, 0.0 }
 0x1be   :  { %1204 = vmatprep.mubr.f32.mxu0 %v1066_v27 }
 0x1bf   :  { %1274 = vmatprep.mubr.f32.mxu1 %v1068_v29  ;;  %1205 = vmatmul.mubr.f32.vlgmr.msra.gmra.mrb[2].mxu0 %v1065_v28 }
 0x1c0   :  { %1275 = vmatmul.mubr.f32.vlgmr.msra.gmra.mrb[2].mxu1 %v1067_v30 }
 0x292   :  { %v1318_v31 = vpop.f32.mrb[2].mxu0 }
 0x293   :  { %v1353_v32 = vpop.f32.mrb[2].mxu1  ;;  %v1319_v34 = vpop.f32.mrb[3].mxu0 }
 0x294   :  { %v1320_v35 = vadd.f32 %v1319_v34, %v1318_v31  ;;  %v1354_v36 = vpop.f32.mrb[3].mxu1 }
 0x295   :  { %v1355_v37 = vadd.f32 %v1354_v36, %v1353_v32 }
 0x296   :  { %v1207_v38 = vadd.f32 %v1320_v35, %v1285_v33 }
 0x298   :  { %v1277_v39 = vadd.f32 %v1355_v37, %v1207_v38 }
 0x29a   :  { %1280 = vst [vmem:[%s3487_s5] sm:$0xff] %v1277_v39 }

</bundles_post_ra>
